<compile_context>
chip_gen: v6e
topology: v6e:2x2x1
jax: 0.10.0
libtpu: 0.0.40
codegen_flags: <defaults>
</compile_context>

<pallas_src>
import functools

import jax
import jax.numpy as jnp
from jax import lax
from jax.experimental import pallas as pl
from jax.experimental.pallas import tpu as pltpu


# ---------------------------------------------------------------------------
# Fused kernel
# ---------------------------------------------------------------------------
def _fused_oc_kernel(x_ref, wkv_ref, bkv_ref, wcf_ref, wfx_ref, bout_ref,   # inputs
                     o_ref,                                                 # output
                     qk_ref, v_ref,                                         # VMEM scratch
                     *, kc, tq, n_q2, proj_rows):
    """Grid step (b, c, qi): attention for q-rows [(c*n_q2+qi)*tq, +tq) of batch b.

    At qi == 0 the (shared) key/query projection and the value projection for the
    whole batch are computed chunk-by-chunk straight into bf16 VMEM scratch; the
    scratch is carried across the (sequential) qi axis of the same (b, c) pair.
    """
    c_id = pl.program_id(1)
    qi = pl.program_id(2)
    hw = qk_ref.shape[0]
    n_chunks = hw // proj_rows

    # ---- once per (batch, q-split): qk = relu(x @ wk' + bk'), v = x @ wv + bv ----
    # Chunked so the f32 intermediate is O(proj_rows * (Kc+Vc)), not O(HW * (Kc+Vc)).
    @pl.when(qi == 0)
    def _():
        def proj_body(ci, carry):
            r0 = pl.multiple_of(ci * proj_rows, proj_rows)
            xc = x_ref[0, pl.ds(r0, proj_rows), :]                           # (pr, Cin) bf16
            kv = jnp.dot(xc, wkv_ref[...],
                         preferred_element_type=jnp.float32) + bkv_ref[...]  # (pr, Kc+Vc) f32
            # NOTE: for production shapes keep Kc (the split point), Vc and Cout
            # multiples of 128 so these slices / the output stores stay lane-aligned.
            qk_ref[pl.ds(r0, proj_rows), :] = jnp.maximum(kv[:, :kc], 0.0).astype(qk_ref.dtype)
            v_ref[pl.ds(r0, proj_rows), :] = kv[:, kc:].astype(v_ref.dtype)
            return carry
        lax.fori_loop(0, n_chunks, proj_body, 0)

    row0 = pl.multiple_of((c_id * n_q2 + qi) * tq, tq)

    q = qk_ref[pl.ds(row0, tq), :]                                    # (tq, Kc) bf16
    k = qk_ref[...]                                                   # (HW, Kc) bf16 (query == key)
    v = v_ref[...]                                                    # (HW, Vc) bf16

    # sim = q @ k^T   (Kc**-0.5 already folded into the weights; no transpose built)
    sim = lax.dot_general(q, k, (((1,), (1,)), ((), ())),
                          preferred_element_type=jnp.float32)         # (tq, HW) f32
    m = jnp.max(sim, axis=-1, keepdims=True)
    e = jnp.exp(sim - m)
    l = jnp.sum(e, axis=-1, keepdims=True)
    # Normalize AFTER the ctx matmul (tq*Vc multiply instead of tq*HW).
    ctx = jnp.dot(e.astype(v.dtype), v, preferred_element_type=jnp.float32)   # (tq, Vc) f32
    ctx = ctx * pl.reciprocal(l, approx=True)

    # self.W folded into the concat conv:  y = relu(ctx @ W_cf + x @ wf_x + b)
    xq = x_ref[0, pl.ds(row0, tq), :]                                 # (tq, Cin) bf16
    y = (jnp.dot(ctx.astype(wcf_ref.dtype), wcf_ref[...],
                 preferred_element_type=jnp.float32)
         + jnp.dot(xq, wfx_ref[...], preferred_element_type=jnp.float32)
         + bout_ref[...])
    o_ref[...] = jnp.maximum(y, 0.0)[None, :, :].astype(o_ref.dtype)  # ReLU; Dropout2d = id (eval)


# ---------------------------------------------------------------------------
# Wrapper
# ---------------------------------------------------------------------------
def _largest_divisor_leq(n, cap):
    cap = max(1, min(n, cap))
    for d in range(cap, 0, -1):
        if n % d == 0:
            return d
    return 1


def base_oc_forward(feats, params, *, key_channels, tq=128, q_splits=2,
                    compute_dtype=jnp.bfloat16, out_dtype=jnp.float32):
    B, Cin, H, W = feats.shape
    HW = H * W
    assert HW % tq == 0 and tq % 8 == 0

    Kc = params["wk"].shape[1]
    Vc = params["wv"].shape[1]
    Cout = params["wf_c"].shape[1]

    f32 = jnp.float32
    # ---- fold all purely-linear pieces into the weights (plain XLA, once) ----
    # BN1 into the key/query conv, then fold the attention scale Kc**-0.5 as
    # Kc**-0.25 on each of query/key (query == key; positive scale commutes with ReLU):
    qk_scale = float(key_channels) ** (-0.25)
    wk_f = params["wk"].astype(f32) * params["s1"] * qk_scale
    bk_f = (params["bk"].astype(f32) * params["s1"] + params["t1"]) * qk_scale
    # One wide matmul for [key/query | value]:
    wkv = jnp.concatenate([wk_f, params["wv"].astype(f32)], axis=1)        # (Cin, Kc+Vc)
    bkv = jnp.concatenate([bk_f, params["bv"].astype(f32)], axis=1)        # (1, Kc+Vc)
    # self.W folded into the concat conv, then BN2 folded in:
    w_cf = (params["ww"].astype(f32) @ params["wf_c"].astype(f32)) * params["s2"]   # (Vc, Cout)
    w_fx = params["wf_x"].astype(f32) * params["s2"]                                # (Cin, Cout)
    b_out = ((params["bw"].astype(f32) @ params["wf_c"].astype(f32)
              + params["bf"]) * params["s2"] + params["t2"])                        # (1, Cout)

    # NCHW -> (B, HW, Cin) channels-last; bf16 operands for the MXU.
    x = jnp.transpose(feats, (0, 2, 3, 1)).reshape(B, HW, Cin).astype(compute_dtype)

    n_q = HW // tq
    # 2-way "parallel" split of the q-tile axis (megacore for small B, e.g. v7x);
    # each split recomputes the cheap projection into its own scratch.
    qs = _largest_divisor_leq(n_q, q_splits)
    n_q2 = n_q // qs
    # Row-chunk size for the once-per-batch projection (multiple of tq, divides HW).
    proj_rows = tq * _largest_divisor_leq(n_q, max(1, 512 // tq))

    # ---- explicit VMEM budget from the actual working set (+25% headroom) ----
    cb = jnp.dtype(compute_dtype).itemsize
    est = (
        2 * HW * Cin * cb                                   # x slab, double-buffered
        + 2 * ((Cin * (Kc + Vc) + Vc * Cout + Cin * Cout) * cb
               + ((Kc + Vc) + Cout) * 4)                    # weights + biases, double-buffered
        + 2 * tq * Cout * 4                                 # output block, double-buffered
        + HW * (Kc + Vc) * cb                               # qk / v scratch
        + 3 * tq * HW * 4                                   # sim / e / softmax temporaries (f32)
        + 2 * proj_rows * (Kc + Vc) * 4                     # projection chunk temporaries
    )
    vmem_limit = int(min(max(int(est * 1.25), 16 * 1024 * 1024), 112 * 1024 * 1024))

    out = pl.pallas_call(
        functools.partial(_fused_oc_kernel, kc=Kc, tq=tq, n_q2=n_q2,
                          proj_rows=proj_rows),
        out_shape=jax.ShapeDtypeStruct((B, HW, Cout), out_dtype),
        grid=(B, qs, n_q2),
        in_specs=[
            # Full per-batch x slab; block index constant over (c, qi) -> fetched
            # once per batch.  (On v7x consider pipeline_mode=pl.Buffered(1) here to
            # reclaim the second x buffer; default double-buffering kept for v5e/v6e.)
            pl.BlockSpec((1, HW, Cin), lambda b, c, qi: (b, 0, 0)),
            pl.BlockSpec((Cin, Kc + Vc), lambda b, c, qi: (0, 0)),
            pl.BlockSpec((1, Kc + Vc), lambda b, c, qi: (0, 0)),
            pl.BlockSpec((Vc, Cout), lambda b, c, qi: (0, 0)),
            pl.BlockSpec((Cin, Cout), lambda b, c, qi: (0, 0)),
            pl.BlockSpec((1, Cout), lambda b, c, qi: (0, 0)),
        ],
        out_specs=pl.BlockSpec((1, tq, Cout),
                               lambda b, c, qi: (b, c * n_q2 + qi, 0)),
        scratch_shapes=[
            pltpu.VMEM((HW, Kc), compute_dtype),   # shared key/query projection
            pltpu.VMEM((HW, Vc), compute_dtype),   # value projection
        ],
        # Batch and q-split axes parallel (megacore); the innermost q-tile axis must
        # be sequential so the scratch filled at qi==0 is carried across its q-tiles.
        compiler_params=pltpu.CompilerParams(
            dimension_semantics=("parallel", "parallel", "arbitrary"),
            vmem_limit_bytes=vmem_limit),
    )(x, wkv.astype(compute_dtype), bkv, w_cf.astype(compute_dtype),
      w_fx.astype(compute_dtype), b_out)

    # back to NCHW
    return jnp.transpose(out.reshape(B, H, W, Cout), (0, 3, 1, 2))


# ---------------------------------------------------------------------------
# Pure-JAX reference (original unfolded f32 math) for a sanity check
# ---------------------------------------------------------------------------
def reference_forward(feats, params, *, key_channels):
    B, Cin, H, W = feats.shape
    HW = H * W
    x = jnp.transpose(feats, (0, 2, 3, 1)).reshape(B, HW, Cin).astype(jnp.float32)
    qk = jnp.maximum((x @ params["wk"] + params["bk"]) * params["s1"] + params["t1"], 0.0)
    v = x @ params["wv"] + params["bv"]
    sim = jnp.einsum("bik,bjk->bij", qk, qk) * float(key_channels) ** (-0.5)
    p = jax.nn.softmax(sim, axis=-1)
    ctx = jnp.einsum("bij,bjc->bic", p, v)
    proj = ctx @ params["ww"] + params["bw"]
    y = proj @ params["wf_c"] + x @ params["wf_x"] + params["bf"]
    y = jnp.maximum(y * params["s2"] + params["t2"], 0.0)
    Cout = y.shape[-1]
    return jnp.transpose(y.reshape(B, H, W, Cout), (0, 3, 1, 2))


# ---------------------------------------------------------------------------
# Parameter construction (deterministic)
# ---------------------------------------------------------------------------
def make_params(key, in_channels, out_channels, key_channels, value_channels):
    ks = jax.random.split(key, 17)
    eps = 1e-5

    def bn_fold(kg, kb, km, kv, c):
        gamma = 1.0 + 0.1 * jax.random.normal(kg, (1, c), jnp.float32)
        beta = 0.1 * jax.random.normal(kb, (1, c), jnp.float32)
        mean = 0.1 * jax.random.normal(km, (1, c), jnp.float32)
        var = jnp.abs(1.0 + 0.1 * jax.random.normal(kv, (1, c), jnp.float32))
        s = gamma * jax.lax.rsqrt(var + eps)
        t = beta - mean * s
        return s, t

    attn_out = out_channels  # must equal in_channels for the 2*in_channels concat
    p = {
        # f_key / f_query (shared): Conv2d(in, key, 1) + BN + ReLU
        "wk": 0.2 * jax.random.normal(ks[0], (in_channels, key_channels), jnp.float32),
        "bk": 0.1 * jax.random.normal(ks[1], (1, key_channels), jnp.float32),
        # f_value: Conv2d(in, value, 1)
        "wv": 0.2 * jax.random.normal(ks[2], (in_channels, value_channels), jnp.float32),
        "bv": 0.1 * jax.random.normal(ks[3], (1, value_channels), jnp.float32),
        # self.W: Conv2d(value, attn_out, 1)  (PyTorch zero-inits; random here to
        # exercise the kernel)
        "ww": 0.2 * jax.random.normal(ks[4], (value_channels, attn_out), jnp.float32),
        "bw": 0.1 * jax.random.normal(ks[5], (1, attn_out), jnp.float32),
        # conv_bn_dropout: Conv2d(2*in, out, 1) split into [context | feats] halves
        "wf_c": 0.2 * jax.random.normal(ks[6], (attn_out, out_channels), jnp.float32),
        "wf_x": 0.2 * jax.random.normal(ks[7], (in_channels, out_channels), jnp.float32),
        "bf": 0.1 * jax.random.normal(ks[8], (1, out_channels), jnp.float32),
    }
    p["s1"], p["t1"] = bn_fold(ks[9], ks[10], ks[11], ks[12], key_channels)
    p["s2"], p["t2"] = bn_fold(ks[13], ks[14], ks[15], ks[16], out_channels)
    return p


if __name__ == "__main__":
    B, Cin, H, W = 2, 8, 16, 16
    out_channels = 8          # == in_channels so cat([context, feats]) has 2*Cin channels
    key_channels = 4
    value_channels = 4

    root = jax.random.PRNGKey(0)
    k_x, k_p = jax.random.split(root)
    feats = jax.random.normal(k_x, (B, Cin, H, W), jnp.float32)
    params = make_params(k_p, Cin, out_channels, key_channels, value_channels)

    fwd = jax.jit(functools.partial(base_oc_forward, key_channels=key_channels))
    out = fwd(feats, params)
    out = jax.block_until_ready(out)

    ref = reference_forward(feats, params, key_channels=key_channels)
    assert out.shape == (B, out_channels, H, W)
    # Tolerance accounts for bf16 MXU operands / bf16 scratch (accumulation is f32).
    assert jnp.allclose(out, ref, rtol=5e-2, atol=5e-2), "mismatch vs pure-JAX reference"

    # TODO(synk): scale>1 path (MaxPool2d + bilinear F.interpolate) unused for sizes=[1];
    # not implemented in-kernel.
    # TODO(synk): for very large HW (>= ~16K on v7x) switch the q-tiled softmax to a
    # fully kv-tiled online (flash) softmax so k/v scratch and the (tq, HW) sim row
    # are never materialized whole.
    print("KERNEL_OK")
</pallas_src>

<mosaic_0001>
module attributes {stable_mosaic.version = 11 : i64} {
  func.func @_fused_oc_kernel(%arg0: i32, %arg1: i32, %arg2: i32, %arg3: memref<1x256x8xbf16, #tpu.memory_space<vmem>>, %arg4: memref<8x8xbf16, #tpu.memory_space<vmem>>, %arg5: memref<1x8xf32, #tpu.memory_space<vmem>>, %arg6: memref<4x8xbf16, #tpu.memory_space<vmem>>, %arg7: memref<8x8xbf16, #tpu.memory_space<vmem>>, %arg8: memref<1x8xf32, #tpu.memory_space<vmem>>, %arg9: memref<1x128x8xf32, #tpu.memory_space<vmem>>, %arg10: memref<256x4xbf16, #tpu.memory_space<vmem>>, %arg11: memref<256x4xbf16, #tpu.memory_space<vmem>>) attributes {dimension_semantics = [#tpu.dimension_semantics<parallel>, #tpu.dimension_semantics<parallel>, #tpu.dimension_semantics<arbitrary>], iteration_bounds = array<i64: 2, 2, 1>, scalar_prefetch = 0 : i64, scratch_operands = 2 : i64, tpu.core_type = #tpu.core_type<tc>, window_params = [{transform_indices = @transform_0, window_bounds = array<i64: 1, 256, 8>}, {pipeline_mode = #tpu.pipeline_mode<synchronous>, transform_indices = @transform_1, window_bounds = array<i64: 8, 8>}, {pipeline_mode = #tpu.pipeline_mode<synchronous>, transform_indices = @transform_2, window_bounds = array<i64: 1, 8>}, {pipeline_mode = #tpu.pipeline_mode<synchronous>, transform_indices = @transform_3, window_bounds = array<i64: 4, 8>}, {pipeline_mode = #tpu.pipeline_mode<synchronous>, transform_indices = @transform_4, window_bounds = array<i64: 8, 8>}, {pipeline_mode = #tpu.pipeline_mode<synchronous>, transform_indices = @transform_5, window_bounds = array<i64: 1, 8>}, {transform_indices = @transform_6, window_bounds = array<i64: 1, 128, 8>}]} {
    %c0_i32 = arith.constant 0 : i32
    %0 = arith.cmpi eq, %arg2, %c0_i32 : i32
    %1 = arith.extui %0 : i1 to i32
    %c0_i32_0 = arith.constant 0 : i32
    %2 = arith.cmpi ne, %1, %c0_i32_0 : i32
    scf.if %2 {
      %c0_i32_22 = arith.constant 0 : i32
      %c256_i32 = arith.constant 256 : i32
      %40 = arith.muli %c0_i32_22, %c256_i32 : i32
      %41 = tpu.assume_multiple %40, 256 : i32
      %c0_23 = arith.constant 0 : index
      %42 = arith.index_cast %41 : i32 to index
      %c0_24 = arith.constant 0 : index
      %43 = vector.load %arg3[%c0_23, %42, %c0_24] : memref<1x256x8xbf16, #tpu.memory_space<vmem>>, vector<1x256x8xbf16>
      %44 = vector.shape_cast %43 : vector<1x256x8xbf16> to vector<256x8xbf16>
      %c0_25 = arith.constant 0 : index
      %c0_26 = arith.constant 0 : index
      %45 = vector.load %arg4[%c0_25, %c0_26] : memref<8x8xbf16, #tpu.memory_space<vmem>>, vector<8x8xbf16>
      %cst_27 = arith.constant dense<0.000000e+00> : vector<256x8xf32>
      %46 = tpu.matmul %44, %45, %cst_27 {dimension_numbers = #tpu.dot_dimension_numbers<[1], [0], [0], [1], [0, 0, 1, 1], [], []>} : vector<256x8xbf16>, vector<8x8xbf16>, vector<256x8xf32> -> vector<256x8xf32>
      %c0_28 = arith.constant 0 : index
      %c0_29 = arith.constant 0 : index
      %47 = vector.load %arg5[%c0_28, %c0_29] : memref<1x8xf32, #tpu.memory_space<vmem>>, vector<1x8xf32>
      %48 = vector.broadcast %47 : vector<1x8xf32> to vector<256x8xf32>
      %49 = arith.addf %46, %48 : vector<256x8xf32>
      %50 = vector.extract_strided_slice %49 {offsets = [0, 0], sizes = [256, 4], strides = [1, 1]} : vector<256x8xf32> to vector<256x4xf32>
      %cst_30 = arith.constant 0.000000e+00 : f32
      %51 = vector.broadcast %cst_30 : f32 to vector<256x4xf32>
      %52 = arith.maximumf %50, %51 : vector<256x4xf32>
      %53 = arith.truncf %52 : vector<256x4xf32> to vector<256x4xbf16>
      %54 = arith.index_cast %41 : i32 to index
      %c0_31 = arith.constant 0 : index
      %55 = vector.load %arg10[%54, %c0_31] : memref<256x4xbf16, #tpu.memory_space<vmem>>, vector<256x4xbf16>
      tpu.vector_store %arg10[%54, %c0_31], %53 {strides = array<i32>} : memref<256x4xbf16, #tpu.memory_space<vmem>>, vector<256x4xbf16>,
      %56 = vector.extract_strided_slice %49 {offsets = [0, 4], sizes = [256, 4], strides = [1, 1]} : vector<256x8xf32> to vector<256x4xf32>
      %57 = arith.truncf %56 : vector<256x4xf32> to vector<256x4xbf16>
      %58 = arith.index_cast %41 : i32 to index
      %c0_32 = arith.constant 0 : index
      %59 = vector.load %arg11[%58, %c0_32] : memref<256x4xbf16, #tpu.memory_space<vmem>>, vector<256x4xbf16>
      tpu.vector_store %arg11[%58, %c0_32], %57 {strides = array<i32>} : memref<256x4xbf16, #tpu.memory_space<vmem>>, vector<256x4xbf16>,
      %c1_i32_33 = arith.constant 1 : i32
    } else {
    }
    %c1_i32 = arith.constant 1 : i32
    %3 = arith.muli %arg1, %c1_i32 : i32
    %4 = arith.addi %3, %arg2 : i32
    %c128_i32 = arith.constant 128 : i32
    %5 = arith.muli %4, %c128_i32 : i32
    %6 = tpu.assume_multiple %5, 128 : i32
    %7 = arith.index_cast %6 : i32 to index
    %c0 = arith.constant 0 : index
    %8 = vector.load %arg10[%7, %c0] : memref<256x4xbf16, #tpu.memory_space<vmem>>, vector<128x4xbf16>
    %c0_1 = arith.constant 0 : index
    %c0_2 = arith.constant 0 : index
    %9 = vector.load %arg10[%c0_1, %c0_2] : memref<256x4xbf16, #tpu.memory_space<vmem>>, vector<256x4xbf16>
    %c0_3 = arith.constant 0 : index
    %c0_4 = arith.constant 0 : index
    %10 = vector.load %arg11[%c0_3, %c0_4] : memref<256x4xbf16, #tpu.memory_space<vmem>>, vector<256x4xbf16>
    %cst = arith.constant dense<0.000000e+00> : vector<128x256xf32>
    %11 = tpu.matmul %8, %9, %cst {dimension_numbers = #tpu.dot_dimension_numbers<[1], [1], [0], [0], [0, 0, 1, 0], [], []>} : vector<128x4xbf16>, vector<256x4xbf16>, vector<128x256xf32> -> vector<128x256xf32>
    %cst_5 = arith.constant dense<0xFF800000> : vector<128xf32>
    %12 = vector.multi_reduction <maximumf>, %11, %cst_5 [1] : vector<128x256xf32> to vector<128xf32>
    %13 = vector.shape_cast %12 : vector<128xf32> to vector<128x1xf32>
    %14 = vector.broadcast %13 : vector<128x1xf32> to vector<128x256xf32>
    %15 = arith.subf %11, %14 : vector<128x256xf32>
    %16 = math.exp %15 : vector<128x256xf32>
    %cst_6 = arith.constant dense<0.000000e+00> : vector<128xf32>
    %17 = vector.multi_reduction <add>, %16, %cst_6 [1] : vector<128x256xf32> to vector<128xf32>
    %18 = vector.shape_cast %17 : vector<128xf32> to vector<128x1xf32>
    %19 = arith.truncf %16 : vector<128x256xf32> to vector<128x256xbf16>
    %cst_7 = arith.constant dense<0.000000e+00> : vector<128x4xf32>
    %20 = tpu.matmul %19, %10, %cst_7 {dimension_numbers = #tpu.dot_dimension_numbers<[1], [0], [0], [1], [0, 0, 1, 1], [], []>} : vector<128x256xbf16>, vector<256x4xbf16>, vector<128x4xf32> -> vector<128x4xf32>
    %21 = tpu.reciprocal %18 {approx = true} : vector<128x1xf32> -> vector<128x1xf32>
    %22 = vector.broadcast %21 : vector<128x1xf32> to vector<128x4xf32>
    %23 = arith.mulf %20, %22 : vector<128x4xf32>
    %c0_8 = arith.constant 0 : index
    %24 = arith.index_cast %6 : i32 to index
    %c0_9 = arith.constant 0 : index
    %25 = vector.load %arg3[%c0_8, %24, %c0_9] : memref<1x256x8xbf16, #tpu.memory_space<vmem>>, vector<1x128x8xbf16>
    %26 = vector.shape_cast %25 : vector<1x128x8xbf16> to vector<128x8xbf16>
    %27 = arith.truncf %23 : vector<128x4xf32> to vector<128x4xbf16>
    %c0_10 = arith.constant 0 : index
    %c0_11 = arith.constant 0 : index
    %28 = vector.load %arg6[%c0_10, %c0_11] : memref<4x8xbf16, #tpu.memory_space<vmem>>, vector<4x8xbf16>
    %cst_12 = arith.constant dense<0.000000e+00> : vector<128x8xf32>
    %29 = tpu.matmul %27, %28, %cst_12 {dimension_numbers = #tpu.dot_dimension_numbers<[1], [0], [0], [1], [0, 0, 1, 1], [], []>} : vector<128x4xbf16>, vector<4x8xbf16>, vector<128x8xf32> -> vector<128x8xf32>
    %c0_13 = arith.constant 0 : index
    %c0_14 = arith.constant 0 : index
    %30 = vector.load %arg7[%c0_13, %c0_14] : memref<8x8xbf16, #tpu.memory_space<vmem>>, vector<8x8xbf16>
    %cst_15 = arith.constant dense<0.000000e+00> : vector<128x8xf32>
    %31 = tpu.matmul %26, %30, %cst_15 {dimension_numbers = #tpu.dot_dimension_numbers<[1], [0], [0], [1], [0, 0, 1, 1], [], []>} : vector<128x8xbf16>, vector<8x8xbf16>, vector<128x8xf32> -> vector<128x8xf32>
    %32 = arith.addf %29, %31 : vector<128x8xf32>
    %c0_16 = arith.constant 0 : index
    %c0_17 = arith.constant 0 : index
    %33 = vector.load %arg8[%c0_16, %c0_17] : memref<1x8xf32, #tpu.memory_space<vmem>>, vector<1x8xf32>
    %34 = vector.broadcast %33 : vector<1x8xf32> to vector<128x8xf32>
    %35 = arith.addf %32, %34 : vector<128x8xf32>
    %cst_18 = arith.constant 0.000000e+00 : f32
    %36 = vector.broadcast %cst_18 : f32 to vector<128x8xf32>
    %37 = arith.maximumf %35, %36 : vector<128x8xf32>
    %38 = vector.shape_cast %37 : vector<128x8xf32> to vector<1x128x8xf32>
    %c0_19 = arith.constant 0 : index
    %c0_20 = arith.constant 0 : index
    %c0_21 = arith.constant 0 : index
    %39 = vector.load %arg9[%c0_19, %c0_20, %c0_21] : memref<1x128x8xf32, #tpu.memory_space<vmem>>, vector<1x128x8xf32>
    tpu.vector_store %arg9[%c0_19, %c0_20, %c0_21], %38 {strides = array<i32>} : memref<1x128x8xf32, #tpu.memory_space<vmem>>, vector<1x128x8xf32>,
    return
  }
  func.func @transform_0(%arg0: i32, %arg1: i32, %arg2: i32) -> (i32, i32, i32) {
    %c0_i32 = arith.constant 0 : i32
    %c0_i32_0 = arith.constant 0 : i32
    %c0_i32_1 = arith.constant 0 : i32
    return %arg0, %c0_i32, %c0_i32_0 : i32, i32, i32
  }
  func.func @transform_1(%arg0: i32, %arg1: i32, %arg2: i32) -> (i32, i32) {
    %c0_i32 = arith.constant 0 : i32
    %c0_i32_0 = arith.constant 0 : i32
    %c0_i32_1 = arith.constant 0 : i32
    return %c0_i32, %c0_i32_0 : i32, i32
  }
  func.func @transform_2(%arg0: i32, %arg1: i32, %arg2: i32) -> (i32, i32) {
    %c0_i32 = arith.constant 0 : i32
    %c0_i32_0 = arith.constant 0 : i32
    %c0_i32_1 = arith.constant 0 : i32
    return %c0_i32, %c0_i32_0 : i32, i32
  }
  func.func @transform_3(%arg0: i32, %arg1: i32, %arg2: i32) -> (i32, i32) {
    %c0_i32 = arith.constant 0 : i32
    %c0_i32_0 = arith.constant 0 : i32
    %c0_i32_1 = arith.constant 0 : i32
    return %c0_i32, %c0_i32_0 : i32, i32
  }
  func.func @transform_4(%arg0: i32, %arg1: i32, %arg2: i32) -> (i32, i32) {
    %c0_i32 = arith.constant 0 : i32
    %c0_i32_0 = arith.constant 0 : i32
    %c0_i32_1 = arith.constant 0 : i32
    return %c0_i32, %c0_i32_0 : i32, i32
  }
  func.func @transform_5(%arg0: i32, %arg1: i32, %arg2: i32) -> (i32, i32) {
    %c0_i32 = arith.constant 0 : i32
    %c0_i32_0 = arith.constant 0 : i32
    %c0_i32_1 = arith.constant 0 : i32
    return %c0_i32, %c0_i32_0 : i32, i32
  }
  func.func @transform_6(%arg0: i32, %arg1: i32, %arg2: i32) -> (i32, i32, i32) {
    %c1_i32 = arith.constant 1 : i32
    %0 = arith.muli %arg1, %c1_i32 : i32
    %1 = arith.addi %0, %arg2 : i32
    %c0_i32 = arith.constant 0 : i32
    %c0_i32_0 = arith.constant 0 : i32
    return %arg0, %1, %c0_i32 : i32, i32, i32
  }
}

</mosaic_0001>

<bundles_post_ra>
// kernel: base_oc_forward.1
= control target key start
LH: loop header
LB: loop body
LE: loop exit
PB: predicated region body
PF: predicated region fallthrough
CT: control target
= control target key end

     0   :  { %s3075_s21 = smov 0   ;;  %s3077_s22 = smov 0   ;;  %s3573_s0 = inlined_call_operand.vmem [shape: bf16[2,256,8], index: 0, kind: input, shape index: {}]   ;;  %s3574_s1 = inlined_call_operand.vmem [shape: bf16[8,8], index: 1, kind: input, shape index: {}]   ;;  %s3575_s2 = inlined_call_operand.vmem [shape: f32[1,8], index: 2, kind: input, shape index: {}]   ;;  %s3576_s3 = inlined_call_operand.vmem [shape: bf16[4,8], index: 3, kind: input, shape index: {}]   ;;  %s3577_s4 = inlined_call_operand.vmem [shape: bf16[8,8], index: 4, kind: input, shape index: {}]   ;;  %s3578_s5 = inlined_call_operand.vmem [shape: f32[1,8], index: 5, kind: input, shape index: {}]   ;;  %s3579_s6 = inlined_call_operand.vmem [shape: f32[2,256,8], index: 6, kind: output, shape index: {}]  }
   0x1   :  { %s3079_s23 = smov 0   ;;  %s3081_s24 = smov 0  }
   0x2   :  { %s3083_s25 = smov 0  }
   0x3 LB: > { %s31_s26 = sadd.s32 1, %s3029_s23  ;;  %s35_s27 = sadd.s32 1, %s3033_s24  ;;  %s3037_s25 = sphi %s3083_s25, %s16_s25   ;;  %s3033_s24 = sphi %s3081_s24, %s3583_s24   ;;  %s3029_s23 = sphi %s3079_s23, %s3582_s23   ;;  %s3025_s22 = sphi %s3077_s22, %s3581_s22   ;;  %s3021_s21 = sphi %s3075_s21, %s3580_s21  }
   0x4   : > { %p33_p0 = scmp.ge.s32.totalorder %s31_s26, 2  ;;  %p2340_p1 = scmp.ge.s32.totalorder %s3037_s25, 1 }
   0x5   : > { %p235_p2 = scmp.lt.s32.totalorder %s3037_s25, 5 }
   0x6   : > { %s3585_s26 = smov (%p33_p0, %s31_s26), 0  ;;  %s3587_s27 = smov (!%p33_p0, %s35_s27), %s3033_s24 }
   0x7   : > { %p236_p3 = pnand %p2340_p1, %p235_p2  ;;  %p37_p4 = scmp.ge.s32.totalorder %s3587_s27, 2 }
   0x8   : > { %p270_p5 = scmp.lt.s32.totalorder (!%p236_p3), %s3025_s22, 1  ;;  %s3039_s12 = smov (!%p236_p3), 124  }
   0x9   : > { %s3589_s27 = smov (%p37_p4, %s3587_s27), 0  ;;  %239 = sbr.rel (%p236_p3) target bundleno = 1223 (0x4c7), region = 44 }
   0xa   : > { %s2443_s13 = sshll.u32 (!%p236_p3), %s3021_s21, 7  ;;  %s2343_s29 = sshll.u32 (!%p236_p3), %s3021_s21, 4 }
   0xb   : > { %s3255_s14 = sshra.s32 (!%p236_p3), %s2443_s13, 3  ;;  %p279_p6 = scmp.lt.s32.totalorder (!%p236_p3), %s2343_s29, 31 }
   0xc   : > { %s2444_s15 = sshll.u32 (!%p236_p3), %s3255_s14, 2 }
   0xd   : > { %s3265_s16 = scalar_lea.vmem (!%p236_p3), [#allocation2], %s2444_s15 }
   0xe   : > { %v324_v0 = vld [vmem:[%s3574_s1] sm:$0xf]  ;;  %vm461_vm0 = vcmask 1043456   ;;  %s3591_s22 = smov (!%p270_p5, %s3025_s22), 1  ;;  %vm412_vm1 = vcmask 64512   ;;  %vm786_vm2 = vcmask 27648  }
   0xf   : > { %2787 = vmatprep.subr.msk.bf16.mxu0 %vm461_vm0, %v324_v0  ;;  %v463_v1 = vsel %vm461_vm0, %v324_v0, 0  ;;  %s2521_s30 = sshll.u32 %s3591_s22, 7  ;;  %v3155_v18 = vld [vmem:[%s3575_s2] ss:$0 sm:$0xff]  ;;  %vm1249_vm3 = vcmask 31744   ;;  %vm2086_vm4 = vcmask 1041408  }
  0x10   : > { %2718 = vmatpush3.bf16.msra.mxu0 %v463_v1  ;;  %s3118_s9 = scalar_lea.vmem %s3573_s0, %s2521_s30  ;;  %s3593_s29 = smov (!%p279_p6, %s2343_s29), 31 }
  0x11   : > { %v2839_v2 = vld [vmem:[%s3118_s9] sm:$0xff]   ;;  %v2840_v3 = vld [vmem:[%s3118_s9 + $0x8] sm:$0xff]   ;;  %v2841_v4 = vld [vmem:[%s3118_s9 + $0x10] sm:$0xff]   ;;  %s1869_s28 = scalar_lea.vmem %s3118_s9, %s2444_s15  ;;  %s2344_s30 = sshll.u32 %s3591_s22, 5 }
  0x12   : > { %2719 = vmatprep.mubr.msk.bf16.mxu0 %vm412_vm1, %v2839_v2  ;;  %v2842_v5 = vld [vmem:[%s3118_s9 + $0x18] sm:$0xff]   ;;  %v2843_v6 = vld [vmem:[%s3118_s9 + $0x20] sm:$0xff]   ;;  %v2844_v7 = vld [vmem:[%s3118_s9 + $0x28] sm:$0xff]   ;;  %s282_s7 = sadd.s32 %s2344_s30, %s3593_s29 }
  0x13   : > { %2720 = vmatmul.mubr.msk.bf16.vlgmr.msra.gmra.mxu0 %vm412_vm1, %v2840_v3  ;;  %v2845_v8 = vld [vmem:[%s3118_s9 + $0x30] sm:$0xff]   ;;  %v2846_v9 = vld [vmem:[%s3118_s9 + $0x38] sm:$0xff]   ;;  %v2847_v10 = vld [vmem:[%s3118_s9 + $0x40] sm:$0xff]   ;;  %s2345_s10 = sshll.u32 %s282_s7, 3 }
  0x14   : > { %2723 = vmatprep.mubr.msk.bf16.mxu0 %vm412_vm1, %v2841_v4  ;;  %v2848_v11 = vld [vmem:[%s3118_s9 + $0x48] sm:$0xff]   ;;  %v2849_v12 = vld [vmem:[%s3118_s9 + $0x50] sm:$0xff]   ;;  %v2850_v13 = vld [vmem:[%s3118_s9 + $0x58] sm:$0xff]  }
  0x15   : > { %v2851_v14 = vld [vmem:[%s3118_s9 + $0x60] sm:$0xff]   ;;  %v2852_v15 = vld [vmem:[%s3118_s9 + $0x68] sm:$0xff]   ;;  %v2853_v16 = vld [vmem:[%s3118_s9 + $0x70] sm:$0xff]  }
  0x16   : > { %v2854_v17 = vld [vmem:[%s3118_s9 + $0x78] sm:$0xff]  }
  0x1b   : > { %2724 = vmatmul.mubr.msk.bf16.gmra.mxu0 %vm412_vm1, %v2842_v5 }
  0x1c   : > { %2727 = vmatprep.mubr.msk.bf16.mxu0 %vm412_vm1, %v2843_v6 }
  0x23   : > { %2728 = vmatmul.mubr.msk.bf16.gmra.mxu0 %vm412_vm1, %v2844_v7 }
  0x24   : > { %2731 = vmatprep.mubr.msk.bf16.mxu0 %vm412_vm1, %v2845_v8 }
  0x2b   : > { %2732 = vmatmul.mubr.msk.bf16.gmra.mxu0 %vm412_vm1, %v2846_v9 }
  0x2c   : > { %2735 = vmatprep.mubr.msk.bf16.mxu0 %vm412_vm1, %v2847_v10 }
  0x33   : > { %2736 = vmatmul.mubr.msk.bf16.gmra.mxu0 %vm412_vm1, %v2848_v11 }
  0x34   : > { %2739 = vmatprep.mubr.msk.bf16.mxu0 %vm412_vm1, %v2849_v12 }
  0x3b   : > { %2740 = vmatmul.mubr.msk.bf16.gmra.mxu0 %vm412_vm1, %v2850_v13 }
  0x3c   : > { %2743 = vmatprep.mubr.msk.bf16.mxu0 %vm412_vm1, %v2851_v14 }
  0x43   : > { %2744 = vmatmul.mubr.msk.bf16.gmra.mxu0 %vm412_vm1, %v2852_v15 }
  0x44   : > { %2747 = vmatprep.mubr.msk.bf16.mxu0 %vm412_vm1, %v2853_v16 }
  0x4b   : > { %2748 = vmatmul.mubr.msk.bf16.gmra.mxu0 %vm412_vm1, %v2854_v17 }
  0xd3   : > { %v2721_v19 = vpop.f32.mrf.mxu0 }
  0xd4   : > { %v508_v20 = vadd.f32 %v2721_v19, %v3155_v18 }
  0xd5   : > { %v499_v21 = vpop.f32.mrf.mxu0 }
  0xd6   : > { %v628_v22 = vmax.f32 %v508_v20, 0.0  ;;  %v3159_v23 = vadd.f32 %v3155_v18, %v499_v21  ;;  %v2556_v24 = vpack.c.bf16 %v508_v20, %v508_v20 }
  0xd7   : > { %v2722_v25 = vpop.f32.mrf.mxu0 }
  0xd8   : > { %v2524_v26 = vpack.c.bf16 %v628_v22, %v628_v22  ;;  %v626_v27 = vmax.f32 %v3159_v23, 0.0  ;;  %v511_v28 = vadd.f32 %v2722_v25, %v3155_v18  ;;  %919 = vrot.lane.b32.xlu0 %v2556_v24, %s3039_s12 }
  0xd9   : > { %v502_v29 = vpop.f32.mrf.mxu0 }
  0xda   : > { %789 = vst.msk [vmem:[#allocation2 + $0x8] sm:$0xf] %vm786_vm2, %v2524_v26  ;;  %v2522_v30 = vpack.c.bf16 %v626_v27, %v626_v27  ;;  %v629_v31 = vmax.f32 %v511_v28, 0.0  ;;  %v3166_v32 = vadd.f32 %v3155_v18, %v502_v29  ;;  %v2557_v33 = vpack.c.bf16 %v511_v28, %v511_v28 }
  0xdb   : > { %v2725_v34 = vpop.f32.mrf.mxu0 }
  0xdc   : > { %787 = vst.msk [vmem:[#allocation2] sm:$0xf] %vm786_vm2, %v2522_v30  ;;  %v2525_v35 = vpack.c.bf16 %v629_v31, %v629_v31  ;;  %v627_v36 = vmax.f32 %v3166_v32, 0.0  ;;  %v524_v37 = vadd.f32 %v2725_v34, %v3155_v18  ;;  %921 = vrot.lane.b32.xlu1 %v2557_v33, %s3039_s12 }
  0xdd   : > { %v515_v38 = vpop.f32.mrf.mxu0 }
  0xde   : > { %790 = vst.msk [vmem:[#allocation2 + $0xc] sm:$0xf] %vm786_vm2, %v2525_v35  ;;  %v2523_v39 = vpack.c.bf16 %v627_v36, %v627_v36  ;;  %v632_v40 = vmax.f32 %v524_v37, 0.0  ;;  %v2560_v41 = vpack.c.bf16 %v524_v37, %v524_v37  ;;  %v516_v42 = vadd.f32 %v3155_v18, %v515_v38 }
  0xdf   : > { %v2726_v43 = vpop.f32.mrf.mxu0 }
  0xe0   : > { %788 = vst.msk [vmem:[#allocation2 + $0x4] sm:$0xf] %vm786_vm2, %v2523_v39  ;;  %v2528_v44 = vpack.c.bf16 %v632_v40, %v632_v40  ;;  %v630_v45 = vmax.f32 %v516_v42, 0.0  ;;  %v527_v46 = vadd.f32 %v2726_v43, %v3155_v18  ;;  %927 = vrot.lane.b32.xlu0 %v2560_v41, %s3039_s12  ;;  %v2558_v47 = vpack.c.bf16 %v516_v42, %v516_v42 }
  0xe1   : > { %v518_v48 = vpop.f32.mrf.mxu0 }
  0xe2   : > { %793 = vst.msk [vmem:[#allocation2 + $0x18] sm:$0xf] %vm786_vm2, %v2528_v44  ;;  %v2526_v49 = vpack.c.bf16 %v630_v45, %v630_v45  ;;  %v633_v50 = vmax.f32 %v527_v46, 0.0  ;;  %v2561_v51 = vpack.c.bf16 %v527_v46, %v527_v46  ;;  %v519_v52 = vadd.f32 %v3155_v18, %v518_v48 }
  0xe3   : > { %v2729_v53 = vpop.f32.mrf.mxu0 }
  0xe4   : > { %791 = vst.msk [vmem:[#allocation2 + $0x10] sm:$0xf] %vm786_vm2, %v2526_v49  ;;  %v2529_v54 = vpack.c.bf16 %v633_v50, %v633_v50  ;;  %v631_v55 = vmax.f32 %v519_v52, 0.0  ;;  %v540_v56 = vadd.f32 %v2729_v53, %v3155_v18  ;;  %929 = vrot.lane.b32.xlu1 %v2561_v51, %s3039_s12  ;;  %923 = vrot.lane.b32.xlu0 %v2558_v47, %s3039_s12 }
  0xe5   : > { %v2559_v57 = vpack.c.bf16 %v519_v52, %v519_v52  ;;  %v531_v58 = vpop.f32.mrf.mxu0 }
  0xe6   : > { %794 = vst.msk [vmem:[#allocation2 + $0x1c] sm:$0xf] %vm786_vm2, %v2529_v54  ;;  %v2527_v59 = vpack.c.bf16 %v631_v55, %v631_v55  ;;  %v636_v60 = vmax.f32 %v540_v56, 0.0  ;;  %v2564_v61 = vpack.c.bf16 %v540_v56, %v540_v56  ;;  %v532_v62 = vadd.f32 %v3155_v18, %v531_v58 }
  0xe7   : > { %v2730_v63 = vpop.f32.mrf.mxu0 }
  0xe8   : > { %792 = vst.msk [vmem:[#allocation2 + $0x14] sm:$0xf] %vm786_vm2, %v2527_v59  ;;  %v2532_v0 = vpack.c.bf16 %v636_v60, %v636_v60  ;;  %v634_v1 = vmax.f32 %v532_v62, 0.0  ;;  %v543_v2 = vadd.f32 %v2730_v63, %v3155_v18  ;;  %925 = vrot.lane.b32.xlu1 %v2559_v57, %s3039_s12  ;;  %935 = vrot.lane.b32.xlu0 %v2564_v61, %s3039_s12 }
  0xe9   : > { %v2562_v3 = vpack.c.bf16 %v532_v62, %v532_v62  ;;  %v534_v4 = vpop.f32.mrf.mxu0 }
  0xea   : > { %797 = vst.msk [vmem:[#allocation2 + $0x28] sm:$0xf] %vm786_vm2, %v2532_v0  ;;  %v2530_v5 = vpack.c.bf16 %v634_v1, %v634_v1  ;;  %v637_v6 = vmax.f32 %v543_v2, 0.0  ;;  %v2565_v7 = vpack.c.bf16 %v543_v2, %v543_v2  ;;  %v535_v8 = vadd.f32 %v3155_v18, %v534_v4 }
  0xeb   : > { %v2733_v9 = vpop.f32.mrf.mxu0 }
  0xec   : > { %795 = vst.msk [vmem:[#allocation2 + $0x20] sm:$0xf] %vm786_vm2, %v2530_v5  ;;  %v2533_v10 = vpack.c.bf16 %v637_v6, %v637_v6  ;;  %v635_v11 = vmax.f32 %v535_v8, 0.0  ;;  %v556_v12 = vadd.f32 %v2733_v9, %v3155_v18  ;;  %937 = vrot.lane.b32.xlu1 %v2565_v7, %s3039_s12  ;;  %931 = vrot.lane.b32.xlu0 %v2562_v3, %s3039_s12 }
  0xed   : > { %v547_v13 = vpop.f32.mrf.mxu0  ;;  %v2563_v15 = vpack.c.bf16 %v535_v8, %v535_v8 }
  0xee   : > { %798 = vst.msk [vmem:[#allocation2 + $0x2c] sm:$0xf] %vm786_vm2, %v2533_v10  ;;  %v2531_v14 = vpack.c.bf16 %v635_v11, %v635_v11  ;;  %v640_v16 = vmax.f32 %v556_v12, 0.0  ;;  %v548_v17 = vadd.f32 %v3155_v18, %v547_v13  ;;  %v2568_v26 = vpack.c.bf16 %v556_v12, %v556_v12 }
  0xef   : > { %v2734_v19 = vpop.f32.mrf.mxu0 }
  0xf0   : > { %796 = vst.msk [vmem:[#allocation2 + $0x24] sm:$0xf] %vm786_vm2, %v2531_v14  ;;  %v2536_v20 = vpack.c.bf16 %v640_v16, %v640_v16  ;;  %v638_v21 = vmax.f32 %v548_v17, 0.0  ;;  %v2566_v22 = vpack.c.bf16 %v548_v17, %v548_v17  ;;  %v559_v24 = vadd.f32 %v2734_v19, %v3155_v18  ;;  %933 = vrot.lane.b32.xlu1 %v2563_v15, %s3039_s12 }
  0xf1   : > { %v550_v25 = vpop.f32.mrf.mxu0 }
  0xf2   : > { %801 = vst.msk [vmem:[#allocation2 + $0x38] sm:$0xf] %vm786_vm2, %v2536_v20  ;;  %v2534_v27 = vpack.c.bf16 %v638_v21, %v638_v21  ;;  %v641_v28 = vmax.f32 %v559_v24, 0.0  ;;  %v551_v29 = vadd.f32 %v3155_v18, %v550_v25  ;;  %939 = vrot.lane.b32.xlu0 %v2566_v22, %s3039_s12  ;;  %v2569_v35 = vpack.c.bf16 %v559_v24, %v559_v24 }
  0xf3   : > { %v2737_v30 = vpop.f32.mrf.mxu0 }
  0xf4   : > { %799 = vst.msk [vmem:[#allocation2 + $0x30] sm:$0xf] %vm786_vm2, %v2534_v27  ;;  %v2537_v31 = vpack.c.bf16 %v641_v28, %v641_v28  ;;  %v639_v33 = vmax.f32 %v551_v29, 0.0  ;;  %v572_v34 = vadd.f32 %v2737_v30, %v3155_v18  ;;  %943 = vrot.lane.b32.xlu1 %v2568_v26, %s3039_s12  ;;  %v2567_v45 = vpack.c.bf16 %v551_v29, %v551_v29 }
  0xf5   : > { %v563_v36 = vpop.f32.mrf.mxu0 }
  0xf6   : > { %802 = vst.msk [vmem:[#allocation2 + $0x3c] sm:$0xf] %vm786_vm2, %v2537_v31  ;;  %v2535_v37 = vpack.c.bf16 %v639_v33, %v639_v33  ;;  %v644_v38 = vmax.f32 %v572_v34, 0.0  ;;  %v2572_v39 = vpack.c.bf16 %v572_v34, %v572_v34  ;;  %v564_v40 = vadd.f32 %v3155_v18, %v563_v36 }
  0xf7   : > { %v2738_v41 = vpop.f32.mrf.mxu0 }
  0xf8   : > { %800 = vst.msk [vmem:[#allocation2 + $0x34] sm:$0xf] %vm786_vm2, %v2535_v37  ;;  %v2540_v42 = vpack.c.bf16 %v644_v38, %v644_v38  ;;  %v642_v43 = vmax.f32 %v564_v40, 0.0  ;;  %v575_v44 = vadd.f32 %v2738_v41, %v3155_v18  ;;  %945 = vrot.lane.b32.xlu1 %v2569_v35, %s3039_s12  ;;  %951 = vrot.lane.b32.xlu0 %v2572_v39, %s3039_s12 }
  0xf9   : > { %v566_v46 = vpop.f32.mrf.mxu0  ;;  %v2570_v48 = vpack.c.bf16 %v564_v40, %v564_v40 }
  0xfa   : > { %805 = vst.msk [vmem:[#allocation2 + $0x48] sm:$0xf] %vm786_vm2, %v2540_v42  ;;  %v2538_v47 = vpack.c.bf16 %v642_v43, %v642_v43  ;;  %v645_v49 = vmax.f32 %v575_v44, 0.0  ;;  %v567_v50 = vadd.f32 %v3155_v18, %v566_v46  ;;  %v2573_v55 = vpack.c.bf16 %v575_v44, %v575_v44 }
  0xfb   : > { %v2741_v51 = vpop.f32.mrf.mxu0 }
  0xfc   : > { %803 = vst.msk [vmem:[#allocation2 + $0x40] sm:$0xf] %vm786_vm2, %v2538_v47  ;;  %v2541_v52 = vpack.c.bf16 %v645_v49, %v645_v49  ;;  %v643_v53 = vmax.f32 %v567_v50, 0.0  ;;  %v588_v54 = vadd.f32 %v2741_v51, %v3155_v18  ;;  %941 = vrot.lane.b32.xlu1 %v2567_v45, %s3039_s12  ;;  %947 = vrot.lane.b32.xlu0 %v2570_v48, %s3039_s12 }
  0xfd   : > { %v579_v56 = vpop.f32.mrf.mxu0  ;;  %v2571_v1 = vpack.c.bf16 %v567_v50, %v567_v50 }
  0xfe   : > { %806 = vst.msk [vmem:[#allocation2 + $0x4c] sm:$0xf] %vm786_vm2, %v2541_v52  ;;  %v2539_v57 = vpack.c.bf16 %v643_v53, %v643_v53  ;;  %v648_v58 = vmax.f32 %v588_v54, 0.0  ;;  %v2576_v59 = vpack.c.bf16 %v588_v54, %v588_v54  ;;  %v580_v60 = vadd.f32 %v3155_v18, %v579_v56 }
  0xff   : > { %v2742_v61 = vpop.f32.mrf.mxu0 }
 0x100   : > { %804 = vst.msk [vmem:[#allocation2 + $0x44] sm:$0xf] %vm786_vm2, %v2539_v57  ;;  %v2544_v62 = vpack.c.bf16 %v648_v58, %v648_v58  ;;  %v646_v63 = vmax.f32 %v580_v60, 0.0  ;;  %v591_v0 = vadd.f32 %v2742_v61, %v3155_v18  ;;  %953 = vrot.lane.b32.xlu1 %v2573_v55, %s3039_s12  ;;  %959 = vrot.lane.b32.xlu0 %v2576_v59, %s3039_s12  ;;  %v2859_v59 = vld [vmem:[#allocation2 + $0x30] sm:$0xff]  }
 0x101   : > { %v582_v2 = vpop.f32.mrf.mxu0  ;;  %v2574_v4 = vpack.c.bf16 %v580_v60, %v580_v60  ;;  %v1293_v60 = vsel %vm1249_vm3, %v2859_v59, 0 }
 0x102   : > { %809 = vst.msk [vmem:[#allocation2 + $0x58] sm:$0xf] %vm786_vm2, %v2544_v62  ;;  %v2542_v3 = vpack.c.bf16 %v646_v63, %v646_v63  ;;  %v649_v5 = vmax.f32 %v591_v0, 0.0  ;;  %v583_v6 = vadd.f32 %v3155_v18, %v582_v2  ;;  %v2577_v11 = vpack.c.bf16 %v591_v0, %v591_v0  ;;  %v2861_v62 = vld [vmem:[#allocation2 + $0x28] sm:$0xff]  }
 0x103   : > { %v2745_v7 = vpop.f32.mrf.mxu0  ;;  %v1290_v63 = vsel %vm1249_vm3, %v2861_v62, 0 }
 0x104   : > { %807 = vst.msk [vmem:[#allocation2 + $0x50] sm:$0xf] %vm786_vm2, %v2542_v3  ;;  %v2545_v8 = vpack.c.bf16 %v649_v5, %v649_v5  ;;  %v647_v9 = vmax.f32 %v583_v6, 0.0  ;;  %v604_v10 = vadd.f32 %v2745_v7, %v3155_v18  ;;  %949 = vrot.lane.b32.xlu1 %v2571_v1, %s3039_s12  ;;  %955 = vrot.lane.b32.xlu0 %v2574_v4, %s3039_s12  ;;  %v2863_v1 = vld [vmem:[#allocation2 + $0x20] sm:$0xff]   ;;  %v2865_v4 = vld [vmem:[#allocation2 + $0x18] sm:$0xff]   ;;  %v2867_v7 = vld [vmem:[#allocation2 + $0x10] sm:$0xff]  }
 0x105   : > { %v595_v12 = vpop.f32.mrf.mxu0  ;;  %v2575_v22 = vpack.c.bf16 %v583_v6, %v583_v6  ;;  %v1287_v2 = vsel %vm1249_vm3, %v2863_v1, 0  ;;  %v1284_v5 = vsel %vm1249_vm3, %v2865_v4, 0 }
 0x106   : > { %810 = vst.msk [vmem:[#allocation2 + $0x5c] sm:$0xf] %vm786_vm2, %v2545_v8  ;;  %v2543_v13 = vpack.c.bf16 %v647_v9, %v647_v9  ;;  %v652_v14 = vmax.f32 %v604_v10, 0.0  ;;  %v2580_v15 = vpack.c.bf16 %v604_v10, %v604_v10  ;;  %v596_v16 = vadd.f32 %v3155_v18, %v595_v12  ;;  %v2868_v9 = vld [vmem:[#allocation2 + $0x48] sm:$0xff]  }
 0x107   : > { %v2746_v17 = vpop.f32.mrf.mxu0  ;;  %v1281_v8 = vsel %vm1249_vm3, %v2867_v7, 0 }
 0x108   : > { %808 = vst.msk [vmem:[#allocation2 + $0x54] sm:$0xf] %vm786_vm2, %v2543_v13  ;;  %v2548_v19 = vpack.c.bf16 %v652_v14, %v652_v14  ;;  %v650_v20 = vmax.f32 %v596_v16, 0.0  ;;  %v607_v21 = vadd.f32 %v2746_v17, %v3155_v18  ;;  %961 = vrot.lane.b32.xlu1 %v2577_v11, %s3039_s12  ;;  %967 = vrot.lane.b32.xlu0 %v2580_v15, %s3039_s12  ;;  %v2869_v11 = vld [vmem:[#allocation2 + $0x8] sm:$0xff]   ;;  %v2870_v14 = vld [vmem:[#allocation2 + $0x40] sm:$0xff]  }
 0x109   : > { %v598_v24 = vpop.f32.mrf.mxu0  ;;  %v2578_v26 = vpack.c.bf16 %v596_v16, %v596_v16  ;;  %v1278_v13 = vsel %vm1249_vm3, %v2869_v11, 0  ;;  %v2871_v16 = vld [vmem:[#allocation2] sm:$0xff]  }
 0x10a   : > { %813 = vst.msk [vmem:[#allocation2 + $0x68] sm:$0xf] %vm786_vm2, %v2548_v19  ;;  %v2546_v25 = vpack.c.bf16 %v650_v20, %v650_v20  ;;  %v653_v27 = vmax.f32 %v607_v21, 0.0  ;;  %v599_v28 = vadd.f32 %v3155_v18, %v598_v24  ;;  %v2581_v34 = vpack.c.bf16 %v607_v21, %v607_v21 }
 0x10b   : > { %v2749_v29 = vpop.f32.mrf.mxu0  ;;  %v1275_v20 = vsel %vm1249_vm3, %v2871_v16, 0 }
 0x10c   : > { %811 = vst.msk [vmem:[#allocation2 + $0x60] sm:$0xf] %vm786_vm2, %v2546_v25  ;;  %v2549_v30 = vpack.c.bf16 %v653_v27, %v653_v27  ;;  %v651_v31 = vmax.f32 %v599_v28, 0.0  ;;  %v620_v33 = vadd.f32 %v2749_v29, %v3155_v18  ;;  %957 = vrot.lane.b32.xlu1 %v2575_v22, %s3039_s12  ;;  %963 = vrot.lane.b32.xlu0 %v2578_v26, %s3039_s12 }
 0x10d   : > { %v611_v35 = vpop.f32.mrf.mxu0  ;;  %v2579_v44 = vpack.c.bf16 %v599_v28, %v599_v28  ;;  %v2864_v3 = vld [vmem:[#allocation2 + $0x58] sm:$0xff]  }
 0x10e   : > { %814 = vst.msk [vmem:[#allocation2 + $0x6c] sm:$0xf] %vm786_vm2, %v2549_v30  ;;  %v2547_v36 = vpack.c.bf16 %v651_v31, %v651_v31  ;;  %v656_v37 = vmax.f32 %v620_v33, 0.0  ;;  %v2584_v38 = vpack.c.bf16 %v620_v33, %v620_v33  ;;  %v612_v39 = vadd.f32 %v3155_v18, %v611_v35 }
 0x10f   : > { %v2750_v40 = vpop.f32.mrf.mxu0  ;;  %v2866_v6 = vld [vmem:[#allocation2 + $0x50] sm:$0xff]  }
 0x110   : > { %812 = vst.msk [vmem:[#allocation2 + $0x64] sm:$0xf] %vm786_vm2, %v2547_v36  ;;  %v2552_v41 = vpack.c.bf16 %v656_v37, %v656_v37  ;;  %v654_v42 = vmax.f32 %v612_v39, 0.0  ;;  %v623_v43 = vadd.f32 %v2750_v40, %v3155_v18  ;;  %969 = vrot.lane.b32.xlu1 %v2581_v34, %s3039_s12  ;;  %975 = vrot.lane.b32.xlu0 %v2584_v38, %s3039_s12 }
 0x111   : > { %v614_v45 = vpop.f32.mrf.mxu0  ;;  %v2582_v47 = vpack.c.bf16 %v612_v39, %v612_v39 }
 0x112   : > { %817 = vst.msk [vmem:[#allocation2 + $0x78] sm:$0xf] %vm786_vm2, %v2552_v41  ;;  %v2550_v46 = vpack.c.bf16 %v654_v42, %v654_v42  ;;  %v657_v48 = vmax.f32 %v623_v43, 0.0  ;;  %v615_v49 = vadd.f32 %v3155_v18, %v614_v45  ;;  %v2585_v52 = vpack.c.bf16 %v623_v43, %v623_v43  ;;  %v2856_v18 = vld [vmem:[#allocation2 + $0x38] sm:$0xff]  }
 0x113   : > { %v1296_v56 = vsel %vm1249_vm3, %v2856_v18, 0 }
 0x114   : > { %815 = vst.msk [vmem:[#allocation2 + $0x70] sm:$0xf] %vm786_vm2, %v2550_v46  ;;  %v2553_v50 = vpack.c.bf16 %v657_v48, %v657_v48  ;;  %v655_v51 = vmax.f32 %v615_v49, 0.0  ;;  %965 = vrot.lane.b32.xlu1 %v2579_v44, %s3039_s12  ;;  %971 = vrot.lane.b32.xlu0 %v2582_v47, %s3039_s12  ;;  %v2583_v54 = vpack.c.bf16 %v615_v49, %v615_v49 }
 0x115   : > { %v2860_v61 = vld [vmem:[#allocation2 + $0x68] sm:$0xff]  }
 0x116   : > { %818 = vst.msk [vmem:[#allocation2 + $0x7c] sm:$0xf] %vm786_vm2, %v2553_v50  ;;  %v2551_v53 = vpack.c.bf16 %v655_v51, %v655_v51 }
 0x117   : > { %v2862_v0 = vld [vmem:[#allocation2 + $0x60] sm:$0xff]  }
 0x118   : > { %816 = vst.msk [vmem:[#allocation2 + $0x74] sm:$0xf] %vm786_vm2, %v2551_v53  ;;  %973 = vrot.lane.b32.xlu1 %v2583_v54, %s3039_s12  ;;  %977 = vrot.lane.b32.xlu0 %v2585_v52, %s3039_s12 }
 0x11d   : > { %v2855_v55 = vld [vmem:[#allocation2 + $0x78] sm:$0xff]  }
 0x11e   : > { %2788 = vmatprep.subr.msk.bf16.mxu1 %vm1249_vm3, %v2855_v55 }
 0x11f   : > { %v2857_v57 = vld [vmem:[#allocation2 + $0x70] sm:$0xff]   ;;  %2604 = vmatpush3.bf16.xpose.msra.mxu1 %v1296_v56  ;;  %v2858_v58 = vld [vmem:[%s3265_s16] sm:$0xff]   ;;  %v2872_v26 = vld [vmem:[%s3265_s16 + $0x8] sm:$0xff]  }
 0x120   : > { %2789 = vmatprep.subr.msk.bf16.mxu1 %vm1249_vm3, %v2857_v57  ;;  %2619 = vmatprep.mubr.msk.bf16.mxu1 %vm1249_vm3, %v2858_v58  ;;  %v2873_v30 = vld [vmem:[%s3265_s16 + $0x10] sm:$0xff]   ;;  %v2874_v36 = vld [vmem:[%s3265_s16 + $0x18] sm:$0xff]   ;;  %v2875_v41 = vld [vmem:[%s3265_s16 + $0x20] sm:$0xff]  }
 0x121   : > { %v2876_v46 = vld [vmem:[%s3265_s16 + $0x28] sm:$0xff]   ;;  %v2877_v51 = vld [vmem:[%s3265_s16 + $0x30] sm:$0xff]   ;;  %v2878_v54 = vld [vmem:[%s3265_s16 + $0x38] sm:$0xff]  }
 0x127   : > { %2606 = vmatpush3.bf16.xpose.msra.mxu1 %v1293_v60 }
 0x128   : > { %2790 = vmatprep.subr.msk.bf16.mxu1 %vm1249_vm3, %v2860_v61 }
 0x12f   : > { %2608 = vmatpush3.bf16.xpose.msra.mxu1 %v1290_v63 }
 0x130   : > { %2791 = vmatprep.subr.msk.bf16.mxu1 %vm1249_vm3, %v2862_v0 }
 0x137   : > { %2610 = vmatpush3.bf16.xpose.msra.mxu1 %v1287_v2 }
 0x138   : > { %2792 = vmatprep.subr.msk.bf16.mxu1 %vm1249_vm3, %v2864_v3 }
 0x13f   : > { %2612 = vmatpush3.bf16.xpose.msra.mxu1 %v1284_v5 }
 0x140   : > { %2793 = vmatprep.subr.msk.bf16.mxu1 %vm1249_vm3, %v2866_v6 }
 0x147   : > { %2614 = vmatpush3.bf16.xpose.msra.mxu1 %v1281_v8 }
 0x148   : > { %2794 = vmatprep.subr.msk.bf16.mxu1 %vm1249_vm3, %v2868_v9 }
 0x14a   : > { %v920_v10 = vpop.permute.xlu0 %919 }
 0x14b   : > { %1013 = vst.msk [vmem:[#allocation3 + $0x8] sm:$0xf] %vm786_vm2, %v920_v10 }
 0x14e   : > { %v922_v12 = vpop.permute.xlu1 %921 }
 0x14f   : > { %1014 = vst.msk [vmem:[#allocation3 + $0xc] sm:$0xf] %vm786_vm2, %v922_v12  ;;  %2616 = vmatpush3.bf16.xpose.msra.mxu1 %v1278_v13 }
 0x150   : > { %2795 = vmatprep.subr.msk.bf16.mxu1 %vm1249_vm3, %v2870_v14 }
 0x152   : > { %v928_v15 = vpop.permute.xlu0 %927 }
 0x153   : > { %1017 = vst.msk [vmem:[#allocation3 + $0x18] sm:$0xf] %vm786_vm2, %v928_v15 }
 0x156   : > { %v930_v17 = vpop.permute.xlu1 %929  ;;  %v924_v19 = vpop.permute.xlu0 %923  ;;  %v2892_v3 = vld [vmem:[#allocation3 + $0x8] sm:$0xff]  }
 0x157   : > { %1018 = vst.msk [vmem:[#allocation3 + $0x1c] sm:$0xf] %vm786_vm2, %v930_v17  ;;  %1015 = vst.msk [vmem:[#allocation3 + $0x10] sm:$0xf] %vm786_vm2, %v924_v19  ;;  %2618 = vmatpush3.bf16.xpose.msra.mxu1 %v1275_v20 }
 0x15a   : > { %v926_v21 = vpop.permute.xlu1 %925  ;;  %v936_v22 = vpop.permute.xlu0 %935 }
 0x15b   : > { %1016 = vst.msk [vmem:[#allocation3 + $0x14] sm:$0xf] %vm786_vm2, %v926_v21  ;;  %1021 = vst.msk [vmem:[#allocation3 + $0x28] sm:$0xf] %vm786_vm2, %v936_v22 }
 0x15e   : > { %v938_v24 = vpop.permute.xlu1 %937  ;;  %v932_v25 = vpop.permute.xlu0 %931  ;;  %2620 = vmatmul.mubr.msk.bf16.vlgmr.msra.gmra.mxu1 %vm1249_vm3, %v2858_v58  ;;  %v2888_v63 = vld [vmem:[#allocation3 + $0x18] sm:$0xff]  }
 0x15f   : > { %1022 = vst.msk [vmem:[#allocation3 + $0x2c] sm:$0xf] %vm786_vm2, %v938_v24  ;;  %1019 = vst.msk [vmem:[#allocation3 + $0x20] sm:$0xf] %vm786_vm2, %v932_v25  ;;  %2621 = vmatprep.mubr.msk.bf16.mxu1 %vm1249_vm3, %v2872_v26 }
 0x162   : > { %v934_v27 = vpop.permute.xlu1 %933  ;;  %v2890_v1 = vld [vmem:[#allocation3 + $0x10] sm:$0xff]  }
 0x163   : > { %1020 = vst.msk [vmem:[#allocation3 + $0x24] sm:$0xf] %vm786_vm2, %v934_v27 }
 0x164   : > { %v940_v28 = vpop.permute.xlu0 %939 }
 0x165   : > { %1023 = vst.msk [vmem:[#allocation3 + $0x30] sm:$0xf] %vm786_vm2, %v940_v28 }
 0x166   : > { %v944_v29 = vpop.permute.xlu1 %943  ;;  %2622 = vmatmul.mubr.msk.bf16.gmra.mxu1 %vm1249_vm3, %v2872_v26  ;;  %v2884_v59 = vld [vmem:[#allocation3 + $0x28] sm:$0xff]  }
 0x167   : > { %1025 = vst.msk [vmem:[#allocation3 + $0x38] sm:$0xf] %vm786_vm2, %v944_v29  ;;  %2623 = vmatprep.mubr.msk.bf16.mxu1 %vm1249_vm3, %v2873_v30 }
 0x16a   : > { %v946_v31 = vpop.permute.xlu1 %945  ;;  %v952_v33 = vpop.permute.xlu0 %951  ;;  %v2886_v61 = vld [vmem:[#allocation3 + $0x20] sm:$0xff]  }
 0x16b   : > { %1026 = vst.msk [vmem:[#allocation3 + $0x3c] sm:$0xf] %vm786_vm2, %v946_v31  ;;  %1029 = vst.msk [vmem:[#allocation3 + $0x48] sm:$0xf] %vm786_vm2, %v952_v33  ;;  %v2555_v33 = vpack.c.bf16 %v3166_v32, %v3166_v32 }
 0x16e   : > { %v942_v34 = vpop.permute.xlu1 %941  ;;  %v948_v35 = vpop.permute.xlu0 %947  ;;  %2624 = vmatmul.mubr.msk.bf16.gmra.mxu1 %vm1249_vm3, %v2873_v30 }
 0x16f   : > { %1024 = vst.msk [vmem:[#allocation3 + $0x34] sm:$0xf] %vm786_vm2, %v942_v34  ;;  %1027 = vst.msk [vmem:[#allocation3 + $0x40] sm:$0xf] %vm786_vm2, %v948_v35  ;;  %2625 = vmatprep.mubr.msk.bf16.mxu1 %vm1249_vm3, %v2874_v36  ;;  %v2554_v34 = vpack.c.bf16 %v3159_v23, %v3159_v23 }
 0x172   : > { %v954_v37 = vpop.permute.xlu1 %953  ;;  %v960_v38 = vpop.permute.xlu0 %959  ;;  %v2880_v55 = vld [vmem:[#allocation3 + $0x38] sm:$0xff]  }
 0x173   : > { %1030 = vst.msk [vmem:[#allocation3 + $0x4c] sm:$0xf] %vm786_vm2, %v954_v37  ;;  %1033 = vst.msk [vmem:[#allocation3 + $0x58] sm:$0xf] %vm786_vm2, %v960_v38 }
 0x176   : > { %v950_v39 = vpop.permute.xlu1 %949  ;;  %v956_v40 = vpop.permute.xlu0 %955  ;;  %2626 = vmatmul.mubr.msk.bf16.gmra.mxu1 %vm1249_vm3, %v2874_v36  ;;  %v2882_v57 = vld [vmem:[#allocation3 + $0x30] sm:$0xff]  }
 0x177   : > { %1028 = vst.msk [vmem:[#allocation3 + $0x44] sm:$0xf] %vm786_vm2, %v950_v39  ;;  %1031 = vst.msk [vmem:[#allocation3 + $0x50] sm:$0xf] %vm786_vm2, %v956_v40  ;;  %2627 = vmatprep.mubr.msk.bf16.mxu1 %vm1249_vm3, %v2875_v41 }
 0x17a   : > { %v962_v42 = vpop.permute.xlu1 %961  ;;  %v968_v43 = vpop.permute.xlu0 %967  ;;  %v2891_v2 = vld [vmem:[#allocation3 + $0x48] sm:$0xff]  }
 0x17b   : > { %1034 = vst.msk [vmem:[#allocation3 + $0x5c] sm:$0xf] %vm786_vm2, %v962_v42  ;;  %1037 = vst.msk [vmem:[#allocation3 + $0x68] sm:$0xf] %vm786_vm2, %v968_v43 }
 0x17e   : > { %v958_v44 = vpop.permute.xlu1 %957  ;;  %v964_v45 = vpop.permute.xlu0 %963  ;;  %2628 = vmatmul.mubr.msk.bf16.gmra.mxu1 %vm1249_vm3, %v2875_v41  ;;  %v2893_v4 = vld [vmem:[#allocation3 + $0x40] sm:$0xff]  }
 0x17f   : > { %1032 = vst.msk [vmem:[#allocation3 + $0x54] sm:$0xf] %vm786_vm2, %v958_v44  ;;  %1035 = vst.msk [vmem:[#allocation3 + $0x60] sm:$0xf] %vm786_vm2, %v964_v45  ;;  %2629 = vmatprep.mubr.msk.bf16.mxu1 %vm1249_vm3, %v2876_v46 }
 0x182   : > { %v970_v47 = vpop.permute.xlu1 %969  ;;  %v976_v48 = vpop.permute.xlu0 %975  ;;  %v2887_v62 = vld [vmem:[#allocation3 + $0x58] sm:$0xff]  }
 0x183   : > { %1038 = vst.msk [vmem:[#allocation3 + $0x6c] sm:$0xf] %vm786_vm2, %v970_v47  ;;  %1041 = vst.msk [vmem:[#allocation3 + $0x78] sm:$0xf] %vm786_vm2, %v976_v48 }
 0x186   : > { %v966_v49 = vpop.permute.xlu1 %965  ;;  %v972_v50 = vpop.permute.xlu0 %971  ;;  %2630 = vmatmul.mubr.msk.bf16.gmra.mxu1 %vm1249_vm3, %v2876_v46  ;;  %v2889_v0 = vld [vmem:[#allocation3 + $0x50] sm:$0xff]  }
 0x187   : > { %1036 = vst.msk [vmem:[#allocation3 + $0x64] sm:$0xf] %vm786_vm2, %v966_v49  ;;  %1039 = vst.msk [vmem:[#allocation3 + $0x70] sm:$0xf] %vm786_vm2, %v972_v50  ;;  %2631 = vmatprep.mubr.msk.bf16.mxu1 %vm1249_vm3, %v2877_v51 }
 0x18a   : > { %v974_v52 = vpop.permute.xlu1 %973  ;;  %v978_v53 = vpop.permute.xlu0 %977  ;;  %v2883_v58 = vld [vmem:[#allocation3 + $0x68] sm:$0xff]  }
 0x18b   : > { %1040 = vst.msk [vmem:[#allocation3 + $0x74] sm:$0xf] %vm786_vm2, %v974_v52  ;;  %1042 = vst.msk [vmem:[#allocation3 + $0x7c] sm:$0xf] %vm786_vm2, %v978_v53 }
 0x18e   : > { %2632 = vmatmul.mubr.msk.bf16.gmra.mxu1 %vm1249_vm3, %v2877_v51  ;;  %v2885_v60 = vld [vmem:[#allocation3 + $0x60] sm:$0xff]  }
 0x18f   : > { %2633 = vmatprep.mubr.msk.bf16.mxu1 %vm1249_vm3, %v2878_v54 }
 0x192   : > { %v2879_v18 = vld [vmem:[#allocation3 + $0x78] sm:$0xff]   ;;  %v2881_v56 = vld [vmem:[#allocation3 + $0x70] sm:$0xff]  }
 0x193   : > { %2635 = vmatprep.subr.bf16.mxu0 %v2879_v18 }
 0x194   : > { %2636 = vmatpush3.bf16.msra.mxu0 %v2880_v55 }
 0x195   : > { %2637 = vmatprep.subr.bf16.mxu0 %v2881_v56 }
 0x196   : > { %2634 = vmatmul.mubr.msk.bf16.gmra.mxu1 %vm1249_vm3, %v2878_v54 }
 0x198   : > { %2638 = vmatpush3.bf16.msra.mxu0 %v2882_v57 }
 0x199   : > { %2639 = vmatprep.subr.bf16.mxu0 %v2883_v58 }
 0x19c   : > { %2640 = vmatpush3.bf16.msra.mxu0 %v2884_v59 }
 0x19d   : > { %2641 = vmatprep.subr.bf16.mxu0 %v2885_v60 }
 0x1a0   : > { %2642 = vmatpush3.bf16.msra.mxu0 %v2886_v61 }
 0x1a1   : > { %2643 = vmatprep.subr.bf16.mxu0 %v2887_v62 }
 0x1a4   : > { %2644 = vmatpush3.bf16.msra.mxu0 %v2888_v63 }
 0x1a5   : > { %2645 = vmatprep.subr.bf16.mxu0 %v2889_v0 }
 0x1a8   : > { %2646 = vmatpush3.bf16.msra.mxu0 %v2890_v1 }
 0x1a9   : > { %2647 = vmatprep.subr.bf16.mxu0 %v2891_v2 }
 0x1ac   : > { %2648 = vmatpush3.bf16.msra.mxu0 %v2892_v3 }
 0x1ad   : > { %2649 = vmatprep.subr.bf16.mxu0 %v2893_v4 }
 0x21e   : > { %v3335_v5 = vpop.f32.mrf.mxu1 }
 0x220   : > { %v3337_v6 = vpop.f32.mrf.mxu1 }
 0x221   : > { %v1435_v7 = vmax.f32 %v3335_v5, %v3337_v6 }
 0x222   : > { %v3341_v8 = vpop.f32.mrf.mxu1 }
 0x223   : > { %1436 = vmax.xlane.f32.xlu0 %v1435_v7 }
 0x224   : > { %v3343_v9 = vpop.f32.mrf.mxu1 }
 0x225   : > { %v1438_v10 = vmax.f32 %v3341_v8, %v3343_v9 }
 0x226   : > { %v3347_v11 = vpop.f32.mrf.mxu1 }
 0x227   : > { %1439 = vmax.xlane.f32.xlu1 %v1438_v10 }
 0x228   : > { %v3349_v12 = vpop.f32.mrf.mxu1 }
 0x229   : > { %v1441_v13 = vmax.f32 %v3347_v11, %v3349_v12 }
 0x22a   : > { %v3353_v14 = vpop.f32.mrf.mxu1 }
 0x22b   : > { %1442 = vmax.xlane.f32.xlu0 %v1441_v13 }
 0x22c   : > { %v3355_v15 = vpop.f32.mrf.mxu1 }
 0x22d   : > { %v1444_v16 = vmax.f32 %v3353_v14, %v3355_v15 }
 0x22e   : > { %v3359_v17 = vpop.f32.mrf.mxu1 }
 0x22f   : > { %1445 = vmax.xlane.f32.xlu1 %v1444_v16 }
 0x230   : > { %v3361_v19 = vpop.f32.mrf.mxu1 }
 0x231   : > { %v1447_v20 = vmax.f32 %v3359_v17, %v3361_v19 }
 0x232   : > { %v3365_v21 = vpop.f32.mrf.mxu1 }
 0x233   : > { %1448 = vmax.xlane.f32.xlu0 %v1447_v20 }
 0x234   : > { %v3367_v22 = vpop.f32.mrf.mxu1 }
 0x235   : > { %v1450_v24 = vmax.f32 %v3365_v21, %v3367_v22 }
 0x236   : > { %v3371_v25 = vpop.f32.mrf.mxu1 }
 0x237   : > { %1451 = vmax.xlane.f32.xlu1 %v1450_v24 }
 0x238   : > { %v3373_v26 = vpop.f32.mrf.mxu1 }
 0x239   : > { %v1453_v23 = vmax.f32 %v3371_v25, %v3373_v26 }
 0x23a   : > { %v3375_v27 = vpop.f32.mrf.mxu1 }
 0x23c   : > { %v3377_v28 = vpop.f32.mrf.mxu1 }
 0x23d   : > { %v1456_v43 = vmax.f32 %v3375_v27, %v3377_v28 }
 0x23e   : > { %v3379_v29 = vpop.f32.mrf.mxu1 }
 0x240   : > { %v3381_v30 = vpop.f32.mrf.mxu1 }
 0x241   : > { %v1459_v44 = vmax.f32 %v3379_v29, %v3381_v30 }
 0x242   : > { %v3383_v31 = vpop.f32.mrf.mxu1 }
 0x244   : > { %v3389_v35 = vpop.f32.mrf.mxu1 }
 0x245   : > { %v1462_v46 = vmax.f32 %v3383_v31, %v3389_v35 }
 0x246   : > { %v3393_v36 = vpop.f32.mrf.mxu1 }
 0x248   : > { %917 = vrot.lane.b32.xlu1 %v2555_v33, %s3039_s12  ;;  %v3395_v37 = vpop.f32.mrf.mxu1 }
 0x249   : > { %915 = vrot.lane.b32.xlu0 %v2554_v34, %s3039_s12  ;;  %v1465_v47 = vmax.f32 %v3393_v36, %v3395_v37  ;;  %s3509_s12 = scalar_lea.vmem %s3579_s6, %s2345_s10 }
 0x24a   : > { %v3397_v38 = vpop.f32.mrf.mxu1 }
 0x24c   : > { %v3399_v39 = vpop.f32.mrf.mxu1 }
 0x24d   : > { %v1468_v49 = vmax.f32 %v3397_v38, %v3399_v39 }
 0x24e   : > { %v3401_v40 = vpop.f32.mrf.mxu1 }
 0x250   : > { %v3403_v32 = vpop.f32.mrf.mxu1 }
 0x251   : > { %v1471_v50 = vmax.f32 %v3401_v40, %v3403_v32 }
 0x252   : > { %v3405_v41 = vpop.f32.mrf.mxu1 }
 0x254   : > { %v3409_v42 = vpop.f32.mrf.mxu1 }
 0x255   : > { %v1474_v52 = vmax.f32 %v3405_v41, %v3409_v42 }
 0x256   : > { %v3415_v45 = vpop.f32.mrf.mxu1 }
 0x258   : > { %v3421_v48 = vpop.f32.mrf.mxu1 }
 0x259   : > { %v1477_v53 = vmax.f32 %v3415_v45, %v3421_v48 }
 0x25a   : > { %v3427_v51 = vpop.f32.mrf.mxu1 }
 0x25c   : > { %v3433_v54 = vpop.f32.mrf.mxu1 }
 0x25d   : > { %v1480_v18 = vmax.f32 %v3427_v51, %v3433_v54 }
 0x268   : > { %1454 = vmax.xlane.f32.xlu0 %v1453_v23 }
 0x26c   : > { %1457 = vmax.xlane.f32.xlu1 %v1456_v43  ;;  %1460 = vmax.xlane.f32.xlu0 %v1459_v44 }
 0x270   : > { %1463 = vmax.xlane.f32.xlu0 %v1462_v46  ;;  %1466 = vmax.xlane.f32.xlu1 %v1465_v47 }
 0x274   : > { %1469 = vmax.xlane.f32.xlu0 %v1468_v49  ;;  %1472 = vmax.xlane.f32.xlu1 %v1471_v50 }
 0x278   : > { %1475 = vmax.xlane.f32.xlu0 %v1474_v52  ;;  %1478 = vmax.xlane.f32.xlu1 %v1477_v53 }
 0x27c   : > { %1481 = vmax.xlane.f32.xlu0 %v1480_v18 }
 0x2ac   : > { %v1437_v55 = vpop.xlane.xlu0 %1436 }
 0x2ad   : > { %v1483_v56 = vsub.f32 %v3335_v5, %v1437_v55  ;;  %v1484_v57 = vsub.f32 %v3337_v6, %v1437_v55 }
 0x2af   : > { %v1515_v58 = vmul.f32 1.442695, %v1483_v56  ;;  %v1517_v59 = vmul.f32 1.442695, %v1484_v57 }
 0x2b0   : > { %v1440_v60 = vpop.xlane.xlu1 %1439 }
 0x2b1   : > { %2903 = vpow2.f32 %v1515_v58  ;;  %v1485_v61 = vsub.f32 %v3341_v8, %v1440_v60  ;;  %v1486_v62 = vsub.f32 %v3343_v9, %v1440_v60 }
 0x2b2   : > { %2905 = vpow2.f32 %v1517_v59 }
 0x2b3   : > { %v1519_v63 = vmul.f32 1.442695, %v1485_v61  ;;  %v1521_v0 = vmul.f32 1.442695, %v1486_v62 }
 0x2b4   : > { %v1443_v1 = vpop.xlane.xlu0 %1442 }
 0x2b5   : > { %2907 = vpow2.f32 %v1519_v63  ;;  %v1487_v2 = vsub.f32 %v3347_v11, %v1443_v1  ;;  %v1488_v3 = vsub.f32 %v3349_v12, %v1443_v1 }
 0x2b6   : > { %2909 = vpow2.f32 %v1521_v0 }
 0x2b7   : > { %v1523_v4 = vmul.f32 1.442695, %v1487_v2  ;;  %v1525_v5 = vmul.f32 1.442695, %v1488_v3 }
 0x2b8   : > { %v1446_v6 = vpop.xlane.xlu1 %1445 }
 0x2b9   : > { %2911 = vpow2.f32 %v1523_v4  ;;  %v1489_v7 = vsub.f32 %v3353_v14, %v1446_v6  ;;  %v1490_v8 = vsub.f32 %v3355_v15, %v1446_v6 }
 0x2ba   : > { %2913 = vpow2.f32 %v1525_v5 }
 0x2bb   : > { %v1527_v9 = vmul.f32 1.442695, %v1489_v7  ;;  %v1529_v10 = vmul.f32 1.442695, %v1490_v8 }
 0x2bc   : > { %v1449_v13 = vpop.xlane.xlu0 %1448 }
 0x2bd   : > { %2915 = vpow2.f32 %v1527_v9  ;;  %v1491_v16 = vsub.f32 %v3359_v17, %v1449_v13  ;;  %v1492_v11 = vsub.f32 %v3361_v19, %v1449_v13 }
 0x2be   : > { %v2904_v20 = vpop.eup %2903  ;;  %2917 = vpow2.f32 %v1529_v10 }
 0x2bf   : > { %v2906_v12 = vpop.eup %2905  ;;  %v1531_v24 = vmul.f32 1.442695, %v1491_v16  ;;  %v1533_v33 = vmul.f32 1.442695, %v1492_v11 }
 0x2c0   : > { %v916_v34 = vpop.permute.xlu0 %915  ;;  %v1452_v23 = vpop.xlane.xlu1 %1451  ;;  %v1579_v43 = vadd.f32 %v2906_v12, %v2904_v20 }
 0x2c1   : > { %2919 = vpow2.f32 %v1531_v24  ;;  %1011 = vst.msk [vmem:[#allocation3] sm:$0xf] %vm786_vm2, %v916_v34  ;;  %v1493_v14 = vsub.f32 %v3365_v21, %v1452_v23  ;;  %v1494_v15 = vsub.f32 %v3367_v22, %v1452_v23 }
 0x2c2   : > { %v2908_v44 = vpop.eup %2907  ;;  %2921 = vpow2.f32 %v1533_v33  ;;  %1580 = vadd.xlane.f32.xlu1 %v1579_v43 }
 0x2c3   : > { %v2910_v17 = vpop.eup %2909  ;;  %v1535_v19 = vmul.f32 1.442695, %v1493_v14  ;;  %v1537_v46 = vmul.f32 1.442695, %v1494_v15  ;;  %v1627_v59 = vpack.c.bf16 %v2908_v44, %v2904_v20 }
 0x2c4   : > { %v918_v47 = vpop.permute.xlu1 %917  ;;  %v1628_v49 = vpack.c.bf16 %v2910_v17, %v2906_v12  ;;  %v1582_v50 = vadd.f32 %v2910_v17, %v2908_v44 }
 0x2c5   : > { %2923 = vpow2.f32 %v1535_v19  ;;  %1012 = vst.msk [vmem:[#allocation3 + $0x4] sm:$0xf] %vm786_vm2, %v918_v47 }
 0x2c6   : > { %v2912_v52 = vpop.eup %2911  ;;  %2925 = vpow2.f32 %v1537_v46  ;;  %1771 = vmatprep.mubr.bf16.mxu0 %v1628_v49  ;;  %1583 = vadd.xlane.f32.xlu0 %v1582_v50 }
 0x2c7   : > { %v2914_v53 = vpop.eup %2913 }
 0x2c8   : > { %v1585_v21 = vadd.f32 %v2914_v53, %v2912_v52 }
 0x2ca   : > { %v2916_v18 = vpop.eup %2915  ;;  %1586 = vadd.xlane.f32.xlu1 %v1585_v21 }
 0x2cb   : > { %v2918_v22 = vpop.eup %2917  ;;  %v1629_v1 = vpack.c.bf16 %v2916_v18, %v2912_v52 }
 0x2cc   : > { %v1588_v55 = vadd.f32 %v2918_v22, %v2916_v18  ;;  %v2894_v56 = vld [vmem:[#allocation3] sm:$0xff]   ;;  %v1630_v61 = vpack.c.bf16 %v2918_v22, %v2914_v53 }
 0x2cd   : > { %2650 = vmatpush3.bf16.msra.mxu0 %v2894_v56 }
 0x2ce   : > { %v2920_v57 = vpop.eup %2919  ;;  %1589 = vadd.xlane.f32.xlu0 %v1588_v55 }
 0x2cf   : > { %v2922_v58 = vpop.eup %2921 }
 0x2d0   : > { %v1591_v60 = vadd.f32 %v2922_v58, %v2920_v57  ;;  %1772 = vmatmul.mubr.bf16.vlgmr.msra.gmra.mxu0 %v1627_v59 }
 0x2d1   : > { %1779 = vmatprep.mubr.bf16.mxu0 %v1630_v61 }
 0x2d2   : > { %v2924_v62 = vpop.eup %2923  ;;  %1592 = vadd.xlane.f32.xlu1 %v1591_v60 }
 0x2d3   : > { %v2926_v63 = vpop.eup %2925  ;;  %v1631_v3 = vpack.c.bf16 %v2924_v62, %v2920_v57 }
 0x2d4   : > { %v1594_v0 = vadd.f32 %v2926_v63, %v2924_v62  ;;  %v1632_v2 = vpack.c.bf16 %v2926_v63, %v2922_v58 }
 0x2d6   : > { %1595 = vadd.xlane.f32.xlu0 %v1594_v0 }
 0x2d8   : > { %1780 = vmatmul.mubr.bf16.gmra.mxu0 %v1629_v1 }
 0x2d9   : > { %1787 = vmatprep.mubr.bf16.mxu0 %v1632_v2 }
 0x2e0   : > { %1788 = vmatmul.mubr.bf16.gmra.mxu0 %v1631_v3 }
 0x2f1   : > { %v1455_v4 = vpop.xlane.xlu0 %1454 }
 0x2f2   : > { %v1495_v5 = vsub.f32 %v3371_v25, %v1455_v4  ;;  %v1496_v6 = vsub.f32 %v3373_v26, %v1455_v4 }
 0x2f4   : > { %v1539_v7 = vmul.f32 1.442695, %v1495_v5  ;;  %v1541_v8 = vmul.f32 1.442695, %v1496_v6 }
 0x2f5   : > { %v1458_v9 = vpop.xlane.xlu1 %1457  ;;  %v1461_v10 = vpop.xlane.xlu0 %1460 }
 0x2f6   : > { %2927 = vpow2.f32 %v1539_v7  ;;  %v1497_v13 = vsub.f32 %v3375_v27, %v1458_v9  ;;  %v1498_v16 = vsub.f32 %v3377_v28, %v1458_v9  ;;  %v1499_v11 = vsub.f32 %v3379_v29, %v1461_v10 }
 0x2f7   : > { %2929 = vpow2.f32 %v1541_v8  ;;  %v1500_v20 = vsub.f32 %v3381_v30, %v1461_v10 }
 0x2f8   : > { %v1543_v12 = vmul.f32 1.442695, %v1497_v13  ;;  %v1545_v24 = vmul.f32 1.442695, %v1498_v16  ;;  %v1547_v33 = vmul.f32 1.442695, %v1499_v11 }
 0x2f9   : > { %v1549_v25 = vmul.f32 1.442695, %v1500_v20  ;;  %v1464_v34 = vpop.xlane.xlu0 %1463  ;;  %v1467_v26 = vpop.xlane.xlu1 %1466 }
 0x2fa   : > { %2931 = vpow2.f32 %v1543_v12  ;;  %v1501_v23 = vsub.f32 %v3383_v31, %v1464_v34  ;;  %v1502_v43 = vsub.f32 %v3389_v35, %v1464_v34  ;;  %v1503_v27 = vsub.f32 %v3393_v36, %v1467_v26 }
 0x2fb   : > { %2933 = vpow2.f32 %v1545_v24  ;;  %v1504_v28 = vsub.f32 %v3395_v37, %v1467_v26 }
 0x2fc   : > { %2935 = vpow2.f32 %v1547_v33  ;;  %v1551_v29 = vmul.f32 1.442695, %v1501_v23  ;;  %v1553_v14 = vmul.f32 1.442695, %v1502_v43  ;;  %v1555_v30 = vmul.f32 1.442695, %v1503_v27 }
 0x2fd   : > { %2937 = vpow2.f32 %v1549_v25  ;;  %v1557_v15 = vmul.f32 1.442695, %v1504_v28  ;;  %v1470_v44 = vpop.xlane.xlu0 %1469  ;;  %v1473_v17 = vpop.xlane.xlu1 %1472 }
 0x2fe   : > { %2939 = vpow2.f32 %v1551_v29  ;;  %v1505_v19 = vsub.f32 %v3397_v38, %v1470_v44  ;;  %v1506_v31 = vsub.f32 %v3399_v39, %v1470_v44  ;;  %v1507_v35 = vsub.f32 %v3401_v40, %v1473_v17 }
 0x2ff   : > { %2941 = vpow2.f32 %v1553_v14  ;;  %v1508_v36 = vsub.f32 %v3403_v32, %v1473_v17 }
 0x300   : > { %2943 = vpow2.f32 %v1555_v30  ;;  %v1559_v37 = vmul.f32 1.442695, %v1505_v19  ;;  %v1561_v46 = vmul.f32 1.442695, %v1506_v31  ;;  %v1563_v47 = vmul.f32 1.442695, %v1507_v35 }
 0x301   : > { %2945 = vpow2.f32 %v1557_v15  ;;  %v1565_v49 = vmul.f32 1.442695, %v1508_v36  ;;  %v1476_v50 = vpop.xlane.xlu0 %1475  ;;  %v1479_v52 = vpop.xlane.xlu1 %1478  ;;  %v1895_v30 = vld [vmem:[%s3577_s4] sm:$0xf]  ;;  %v2896_v36 = vld [vmem:[%s1869_s28 + $0x8] sm:$0xff]  }
 0x302   : > { %2947 = vpow2.f32 %v1559_v37  ;;  %v1509_v53 = vsub.f32 %v3405_v41, %v1476_v50  ;;  %v1510_v38 = vsub.f32 %v3409_v42, %v1476_v50  ;;  %v1511_v39 = vsub.f32 %v3415_v45, %v1479_v52  ;;  %v1894_v15 = vld [vmem:[%s3576_s3] sm:$0x3]  ;;  %2796 = vmatprep.subr.msk.bf16.mxu1 %vm461_vm0, %v1895_v30  ;;  %v2900_v50 = vld [vmem:[%s1869_s28 + $0x28] sm:$0xff]  }
 0x303   : > { %v2928_v21 = vpop.eup %2927  ;;  %2949 = vpow2.f32 %v1561_v46  ;;  %v1512_v40 = vsub.f32 %v3421_v48, %v1479_v52  ;;  %2797 = vmatprep.subr.msk.bf16.mxu0 %vm2086_vm4, %v1894_v15  ;;  %v1963_v19 = vsel %vm461_vm0, %v1895_v30, 0  ;;  %v2088_v31 = vsel %vm2086_vm4, %v1894_v15, 0  ;;  %v2895_v35 = vld [vmem:[%s1869_s28] sm:$0xff]   ;;  %v2897_v46 = vld [vmem:[%s1869_s28 + $0x10] sm:$0xff]  }
 0x304   : > { %v2930_v32 = vpop.eup %2929  ;;  %2951 = vpow2.f32 %v1563_v47  ;;  %v1567_v18 = vmul.f32 1.442695, %v1509_v53  ;;  %v1569_v22 = vmul.f32 1.442695, %v1510_v38  ;;  %v1571_v55 = vmul.f32 1.442695, %v1511_v39  ;;  %2752 = vmatpush3.bf16.msra.mxu1 %v1963_v19  ;;  %2770 = vmatpush3.bf16.msra.mxu0 %v2088_v31 }
 0x305   : > { %2953 = vpow2.f32 %v1565_v49  ;;  %v1573_v56 = vmul.f32 1.442695, %v1512_v40  ;;  %v1482_v57 = vpop.xlane.xlu0 %1481  ;;  %v1597_v58 = vadd.f32 %v2930_v32, %v2928_v21  ;;  %2753 = vmatprep.mubr.msk.bf16.mxu1 %vm412_vm1, %v2895_v35  ;;  %v2898_v47 = vld [vmem:[%s1869_s28 + $0x18] sm:$0xff]   ;;  %v2899_v49 = vld [vmem:[%s1869_s28 + $0x20] sm:$0xff]   ;;  %v2901_v52 = vld [vmem:[%s1869_s28 + $0x30] sm:$0xff]  }
 0x306   : > { %2955 = vpow2.f32 %v1567_v18  ;;  %v1513_v41 = vsub.f32 %v3427_v51, %v1482_v57  ;;  %v1514_v42 = vsub.f32 %v3433_v54, %v1482_v57  ;;  %v2902_v53 = vld [vmem:[%s1869_s28 + $0x38] sm:$0xff]  }
 0x307   : > { %v2932_v59 = vpop.eup %2931  ;;  %2957 = vpow2.f32 %v1569_v22  ;;  %1598 = vadd.xlane.f32.xlu1 %v1597_v58  ;;  %2754 = vmatmul.mubr.msk.bf16.vlgmr.msra.gmra.mxu1 %vm412_vm1, %v2896_v36 }
 0x308   : > { %v2934_v45 = vpop.eup %2933  ;;  %2959 = vpow2.f32 %v1571_v55  ;;  %v1575_v48 = vmul.f32 1.442695, %v1513_v41  ;;  %v1577_v60 = vmul.f32 1.442695, %v1514_v42  ;;  %v1633_v61 = vpack.c.bf16 %v2932_v59, %v2928_v21  ;;  %2757 = vmatprep.mubr.msk.bf16.mxu1 %vm412_vm1, %v2897_v46 }
 0x309   : > { %v2936_v62 = vpop.eup %2935  ;;  %2961 = vpow2.f32 %v1573_v56  ;;  %v1634_v63 = vpack.c.bf16 %v2934_v45, %v2930_v32  ;;  %v1600_v0 = vadd.f32 %v2934_v45, %v2932_v59 }
 0x30a   : > { %v2938_v1 = vpop.eup %2937  ;;  %2963 = vpow2.f32 %v1575_v48 }
 0x30b   : > { %v2940_v2 = vpop.eup %2939  ;;  %2965 = vpow2.f32 %v1577_v60  ;;  %1795 = vmatprep.mubr.bf16.mxu0 %v1634_v63  ;;  %v1603_v51 = vadd.f32 %v2938_v1, %v2936_v62  ;;  %1601 = vadd.xlane.f32.xlu0 %v1600_v0 }
 0x30c   : > { %v2942_v54 = vpop.eup %2941  ;;  %1796 = vmatmul.mubr.bf16.gmra.mxu0 %v1633_v61  ;;  %v1635_v11 = vpack.c.bf16 %v2940_v2, %v2936_v62 }
 0x30d   : > { %v2944_v3 = vpop.eup %2943  ;;  %1604 = vadd.xlane.f32.xlu1 %v1603_v51  ;;  %v1636_v4 = vpack.c.bf16 %v2942_v54, %v2938_v1  ;;  %v1606_v5 = vadd.f32 %v2942_v54, %v2940_v2 }
 0x30e   : > { %v2946_v6 = vpop.eup %2945 }
 0x30f   : > { %v2948_v7 = vpop.eup %2947  ;;  %1803 = vmatprep.mubr.bf16.mxu0 %v1636_v4  ;;  %v1609_v8 = vadd.f32 %v2946_v6, %v2944_v3  ;;  %1607 = vadd.xlane.f32.xlu0 %v1606_v5 }
 0x310   : > { %v2950_v9 = vpop.eup %2949  ;;  %v1637_v29 = vpack.c.bf16 %v2948_v7, %v2944_v3  ;;  %2758 = vmatmul.mubr.msk.bf16.gmra.mxu1 %vm412_vm1, %v2898_v47 }
 0x311   : > { %v2952_v10 = vpop.eup %2951  ;;  %1610 = vadd.xlane.f32.xlu1 %v1609_v8  ;;  %v1612_v13 = vadd.f32 %v2950_v9, %v2948_v7  ;;  %v1638_v24 = vpack.c.bf16 %v2950_v9, %v2946_v6  ;;  %2761 = vmatprep.mubr.msk.bf16.mxu1 %vm412_vm1, %v2899_v49 }
 0x312   : > { %v2954_v16 = vpop.eup %2953 }
 0x313   : > { %v2956_v20 = vpop.eup %2955  ;;  %v1615_v12 = vadd.f32 %v2954_v16, %v2952_v10  ;;  %1613 = vadd.xlane.f32.xlu0 %v1612_v13 }
 0x314   : > { %v2958_v33 = vpop.eup %2957  ;;  %1804 = vmatmul.mubr.bf16.gmra.mxu0 %v1635_v11  ;;  %v1639_v44 = vpack.c.bf16 %v2956_v20, %v2952_v10 }
 0x315   : > { %v2960_v25 = vpop.eup %2959  ;;  %1616 = vadd.xlane.f32.xlu1 %v1615_v12  ;;  %1811 = vmatprep.mubr.bf16.mxu0 %v1638_v24  ;;  %v1618_v34 = vadd.f32 %v2958_v33, %v2956_v20  ;;  %v1640_v14 = vpack.c.bf16 %v2958_v33, %v2954_v16 }
 0x316   : > { %v2962_v26 = vpop.eup %2961 }
 0x317   : > { %v2964_v23 = vpop.eup %2963  ;;  %v1621_v43 = vadd.f32 %v2962_v26, %v2960_v25  ;;  %1619 = vadd.xlane.f32.xlu0 %v1618_v34 }
 0x318   : > { %v2966_v27 = vpop.eup %2965  ;;  %v1641_v37 = vpack.c.bf16 %v2964_v23, %v2960_v25  ;;  %2762 = vmatmul.mubr.msk.bf16.gmra.mxu1 %vm412_vm1, %v2900_v50 }
 0x319   : > { %1622 = vadd.xlane.f32.xlu1 %v1621_v43  ;;  %v1624_v28 = vadd.f32 %v2966_v27, %v2964_v23  ;;  %v1642_v17 = vpack.c.bf16 %v2966_v27, %v2962_v26  ;;  %2765 = vmatprep.mubr.msk.bf16.mxu1 %vm412_vm1, %v2901_v52 }
 0x31b   : > { %1625 = vadd.xlane.f32.xlu0 %v1624_v28 }
 0x31c   : > { %1812 = vmatmul.mubr.bf16.gmra.mxu0 %v1637_v29 }
 0x31d   : > { %1819 = vmatprep.mubr.bf16.mxu0 %v1640_v14 }
 0x320   : > { %2766 = vmatmul.mubr.msk.bf16.gmra.mxu1 %vm412_vm1, %v2902_v53 }
 0x324   : > { %1820 = vmatmul.mubr.bf16.gmra.mxu0 %v1639_v44 }
 0x325   : > { %1827 = vmatprep.mubr.bf16.mxu0 %v1642_v17 }
 0x32c   : > { %1828 = vmatmul.mubr.bf16.gmra.mxu0 %v1641_v37 }
 0x34b   : > { %v1581_v38 = vpop.xlane.xlu1 %1580 }
 0x34c   : > { %2967 = vrcp.f32 %v1581_v38 }
 0x34f   : > { %v1584_v39 = vpop.xlane.xlu0 %1583 }
 0x350   : > { %2969 = vrcp.f32 %v1584_v39 }
 0x353   : > { %v1587_v21 = vpop.xlane.xlu1 %1586 }
 0x354   : > { %2971 = vrcp.f32 %v1587_v21 }
 0x357   : > { %v1590_v40 = vpop.xlane.xlu0 %1589 }
 0x358   : > { %2973 = vrcp.f32 %v1590_v40 }
 0x359   : > { %v2968_v57 = vpop.eup %2967 }
 0x35b   : > { %v1593_v58 = vpop.xlane.xlu1 %1592 }
 0x35c   : > { %2975 = vrcp.f32 %v1593_v58 }
 0x35d   : > { %v2970_v42 = vpop.eup %2969 }
 0x35f   : > { %v1596_v59 = vpop.xlane.xlu0 %1595 }
 0x360   : > { %2977 = vrcp.f32 %v1596_v59 }
 0x361   : > { %v2972_v2 = vpop.eup %2971 }
 0x365   : > { %v2974_v54 = vpop.eup %2973 }
 0x369   : > { %v2976_v13 = vpop.eup %2975 }
 0x36d   : > { %v2978_v11 = vpop.eup %2977 }
 0x390   : > { %v2651_v32 = vpop.f32.mrf.mxu0  ;;  %v1599_v33 = vpop.xlane.xlu1 %1598 }
 0x391   : > { %2979 = vrcp.f32 %v1599_v33 }
 0x392   : > { %v2652_v18 = vpop.f32.mrf.mxu0 }
 0x393   : > { %v2653_v55 = vadd.f32 %v2652_v18, %v2651_v32 }
 0x394   : > { %v2654_v22 = vpop.f32.mrf.mxu0  ;;  %v1602_v25 = vpop.xlane.xlu0 %1601 }
 0x395   : > { %v1852_v48 = vmul.f32 %v2968_v57, %v2653_v55  ;;  %2981 = vrcp.f32 %v1602_v25 }
 0x396   : > { %v2655_v56 = vpop.f32.mrf.mxu0  ;;  %v1605_v34 = vpop.xlane.xlu1 %1604 }
 0x397   : > { %v2656_v41 = vadd.f32 %v2655_v56, %v2654_v22  ;;  %2983 = vrcp.f32 %v1605_v34 }
 0x398   : > { %v2657_v45 = vpop.f32.mrf.mxu0  ;;  %v1608_v26 = vpop.xlane.xlu0 %1607 }
 0x399   : > { %v1853_v60 = vmul.f32 %v2970_v42, %v2656_v41  ;;  %2985 = vrcp.f32 %v1608_v26 }
 0x39a   : > { %v2658_v61 = vpop.f32.mrf.mxu0  ;;  %v1611_v30 = vpop.xlane.xlu1 %1610 }
 0x39b   : > { %v1886_v62 = vpack.c.bf16 %v1853_v60, %v1852_v48  ;;  %v2659_v0 = vadd.f32 %v2658_v61, %v2657_v45  ;;  %2987 = vrcp.f32 %v1611_v30 }
 0x39c   : > { %v2660_v63 = vpop.f32.mrf.mxu0  ;;  %v1614_v17 = vpop.xlane.xlu0 %1613 }
 0x39d   : > { %2771 = vmatprep.mubr.msk.bf16.mxu0 %vm1249_vm3, %v1886_v62  ;;  %v1854_v4 = vmul.f32 %v2972_v2, %v2659_v0  ;;  %2989 = vrcp.f32 %v1614_v17 }
 0x39e   : > { %v2661_v1 = vpop.f32.mrf.mxu0  ;;  %v2980_v14 = vpop.eup %2979 }
 0x39f   : > { %v2662_v51 = vadd.f32 %v2661_v1, %v2660_v63  ;;  %v1617_v52 = vpop.xlane.xlu1 %1616 }
 0x3a0   : > { %v2663_v3 = vpop.f32.mrf.mxu0  ;;  %v1620_v39 = vpop.xlane.xlu0 %1619  ;;  %2991 = vrcp.f32 %v1617_v52 }
 0x3a1   : > { %v1855_v5 = vmul.f32 %v2974_v54, %v2662_v51  ;;  %2993 = vrcp.f32 %v1620_v39 }
 0x3a2   : > { %v2664_v6 = vpop.f32.mrf.mxu0  ;;  %v2982_v44 = vpop.eup %2981 }
 0x3a3   : > { %v1887_v7 = vpack.c.bf16 %v1855_v5, %v1854_v4  ;;  %v2665_v9 = vadd.f32 %v2664_v6, %v2663_v3  ;;  %v1623_v41 = vpop.xlane.xlu1 %1622 }
 0x3a4   : > { %v2666_v8 = vpop.f32.mrf.mxu0  ;;  %v2984_v50 = vpop.eup %2983  ;;  %2995 = vrcp.f32 %v1623_v41 }
 0x3a5   : > { %2772 = vmatmul.mubr.msk.bf16.vlgmr.msra.gmra.mxu0 %vm1249_vm3, %v1887_v7  ;;  %v1856_v20 = vmul.f32 %v2976_v13, %v2665_v9  ;;  %v1626_v45 = vpop.xlane.xlu0 %1625 }
 0x3a6   : > { %v2667_v10 = vpop.f32.mrf.mxu0  ;;  %v2986_v38 = vpop.eup %2985  ;;  %2997 = vrcp.f32 %v1626_v45 }
 0x3a7   : > { %v2668_v16 = vadd.f32 %v2667_v10, %v2666_v8 }
 0x3a8   : > { %v2988_v58 = vpop.eup %2987 }
 0x3a9   : > { %v1857_v12 = vmul.f32 %v2978_v11, %v2668_v16 }
 0x3aa   : > { %v2990_v59 = vpop.eup %2989 }
 0x3ab   : > { %v1888_v24 = vpack.c.bf16 %v1857_v12, %v1856_v20 }
 0x3ad   : > { %2775 = vmatprep.mubr.msk.bf16.mxu0 %vm1249_vm3, %v1888_v24  ;;  %v2992_v51 = vpop.eup %2991 }
 0x3ae   : > { %v2994_v3 = vpop.eup %2993 }
 0x3b1   : > { %v2996_v16 = vpop.eup %2995 }
 0x3b3   : > { %v2998_v20 = vpop.eup %2997 }
 0x3c7   : > { %v2755_v25 = vpop.f32.mrf.mxu1 }
 0x3c9   : > { %v1999_v34 = vpop.f32.mrf.mxu1 }
 0x3cc   : > { %v2669_v23 = vpop.f32.mrf.mxu0 }
 0x3ce   : > { %v2670_v43 = vpop.f32.mrf.mxu0 }
 0x3cf   : > { %v2671_v28 = vadd.f32 %v2670_v43, %v2669_v23  ;;  %v3503_v23 = vld [vmem:[%s3578_s5] ss:$0 sm:$0xff]  ;;  %v2756_v43 = vpop.f32.mrf.mxu1 }
 0x3d0   : > { %v2672_v27 = vpop.f32.mrf.mxu0 }
 0x3d1   : > { %v1858_v31 = vmul.f32 %v2980_v14, %v2671_v28 }
 0x3d2   : > { %v2673_v29 = vpop.f32.mrf.mxu0 }
 0x3d3   : > { %v2674_v15 = vadd.f32 %v2673_v29, %v2672_v27 }
 0x3d4   : > { %v2675_v19 = vpop.f32.mrf.mxu0 }
 0x3d5   : > { %v1859_v35 = vmul.f32 %v2982_v44, %v2674_v15  ;;  %v2002_v15 = vpop.f32.mrf.mxu1 }
 0x3d6   : > { %v2676_v36 = vpop.f32.mrf.mxu0 }
 0x3d7   : > { %v1889_v37 = vpack.c.bf16 %v1859_v35, %v1858_v31  ;;  %v2677_v47 = vadd.f32 %v2676_v36, %v2675_v19 }
 0x3d8   : > { %v2678_v46 = vpop.f32.mrf.mxu0 }
 0x3d9   : > { %2776 = vmatmul.mubr.msk.bf16.gmra.mxu0 %vm1249_vm3, %v1889_v37  ;;  %v1860_v40 = vmul.f32 %v2984_v50, %v2677_v47  ;;  %v2759_v50 = vpop.f32.mrf.mxu1 }
 0x3da   : > { %v2679_v49 = vpop.f32.mrf.mxu0 }
 0x3db   : > { %v2680_v53 = vadd.f32 %v2679_v49, %v2678_v46  ;;  %v2015_v52 = vpop.f32.mrf.mxu1 }
 0x3dc   : > { %v2681_v21 = vpop.f32.mrf.mxu0 }
 0x3dd   : > { %v1861_v32 = vmul.f32 %v2986_v38, %v2680_v53  ;;  %v2760_v38 = vpop.f32.mrf.mxu1 }
 0x3de   : > { %v2682_v18 = vpop.f32.mrf.mxu0 }
 0x3df   : > { %v1890_v22 = vpack.c.bf16 %v1861_v32, %v1860_v40  ;;  %v2683_v56 = vadd.f32 %v2682_v18, %v2681_v21 }
 0x3e0   : > { %v2684_v55 = vpop.f32.mrf.mxu0 }
 0x3e1   : > { %2779 = vmatprep.mubr.msk.bf16.mxu0 %vm1249_vm3, %v1890_v22  ;;  %v1862_v60 = vmul.f32 %v2988_v58, %v2683_v56  ;;  %v2018_v22 = vpop.f32.mrf.mxu1 }
 0x3e2   : > { %v2685_v57 = vpop.f32.mrf.mxu0 }
 0x3e3   : > { %v2686_v42 = vadd.f32 %v2685_v57, %v2684_v55  ;;  %v2763_v45 = vpop.f32.mrf.mxu1 }
 0x3e4   : > { %v2687_v48 = vpop.f32.mrf.mxu0 }
 0x3e5   : > { %v1863_v61 = vmul.f32 %v2990_v59, %v2686_v42 }
 0x3e6   : > { %v2688_v62 = vpop.f32.mrf.mxu0 }
 0x3e7   : > { %v1891_v63 = vpack.c.bf16 %v1863_v61, %v1862_v60  ;;  %v2689_v1 = vadd.f32 %v2688_v62, %v2687_v48  ;;  %v2031_v62 = vpop.f32.mrf.mxu1 }
 0x3e8   : > { %v2690_v0 = vpop.f32.mrf.mxu0 }
 0x3e9   : > { %2780 = vmatmul.mubr.msk.bf16.gmra.mxu0 %vm1249_vm3, %v1891_v63  ;;  %v1864_v5 = vmul.f32 %v2992_v51, %v2689_v1 }
 0x3ea   : > { %v2691_v2 = vpop.f32.mrf.mxu0 }
 0x3eb   : > { %v2692_v54 = vadd.f32 %v2691_v2, %v2690_v0  ;;  %v2764_v0 = vpop.f32.mrf.mxu1 }
 0x3ec   : > { %v2693_v4 = vpop.f32.mrf.mxu0 }
 0x3ed   : > { %v1865_v6 = vmul.f32 %v2994_v3, %v2692_v54 }
 0x3ee   : > { %v2694_v7 = vpop.f32.mrf.mxu0 }
 0x3ef   : > { %v1892_v8 = vpack.c.bf16 %v1865_v6, %v1864_v5  ;;  %v2695_v10 = vadd.f32 %v2694_v7, %v2693_v4  ;;  %v2034_v4 = vpop.f32.mrf.mxu1 }
 0x3f0   : > { %v2696_v9 = vpop.f32.mrf.mxu0 }
 0x3f1   : > { %2783 = vmatprep.mubr.msk.bf16.mxu0 %vm1249_vm3, %v1892_v8  ;;  %v1866_v12 = vmul.f32 %v2996_v16, %v2695_v10 }
 0x3f2   : > { %v2697_v13 = vpop.f32.mrf.mxu0 }
 0x3f3   : > { %v2698_v11 = vadd.f32 %v2697_v13, %v2696_v9 }
 0x3f5   : > { %v1867_v24 = vmul.f32 %v2998_v20, %v2698_v11  ;;  %v2767_v20 = vpop.f32.mrf.mxu1 }
 0x3f7   : > { %v1893_v33 = vpack.c.bf16 %v1867_v24, %v1866_v12  ;;  %v2047_v24 = vpop.f32.mrf.mxu1 }
 0x3f9   : > { %2784 = vmatmul.mubr.msk.bf16.gmra.mxu0 %vm1249_vm3, %v1893_v33 }
 0x465   : > { %v2773_v26 = vpop.f32.mrf.mxu0 }
 0x466   : > { %v2133_v27 = vadd.f32 %v2773_v26, %v2755_v25 }
 0x467   : > { %v2124_v28 = vpop.f32.mrf.mxu0 }
 0x468   : > { %v2196_v29 = vadd.f32 %v3503_v23, %v2133_v27  ;;  %v2125_v14 = vadd.f32 %v2124_v28, %v1999_v34  ;;  %v2768_v34 = vpop.f32.mrf.mxu1 }
 0x469   : > { %v2774_v30 = vpop.f32.mrf.mxu0 }
 0x46a   : > { %v2212_v44 = vmax.f32 %v2196_v29, 0.0  ;;  %v2194_v17 = vadd.f32 %v3503_v23, %v2125_v14  ;;  %v2136_v19 = vadd.f32 %v2774_v30, %v2756_v43 }
 0x46b   : > { %v2127_v31 = vpop.f32.mrf.mxu0 }
 0x46c   : > { %2228 = vst.msk [vmem:[%s3509_s12 + $0x10] sm:$0xff] %vm412_vm1, %v2212_v44  ;;  %v2210_v35 = vmax.f32 %v2194_v17, 0.0  ;;  %v2197_v36 = vadd.f32 %v3503_v23, %v2136_v19  ;;  %v2128_v37 = vadd.f32 %v2127_v31, %v2002_v15  ;;  %v2050_v15 = vpop.f32.mrf.mxu1 }
 0x46e   : > { %2226 = vst.msk [vmem:[%s3509_s12] sm:$0xff] %vm412_vm1, %v2210_v35  ;;  %v2213_v46 = vmax.f32 %v2197_v36, 0.0  ;;  %v2195_v47 = vadd.f32 %v3503_v23, %v2128_v37 }
 0x470   : > { %2229 = vst.msk [vmem:[%s3509_s12 + $0x18] sm:$0xff] %vm412_vm1, %v2213_v46  ;;  %v2211_v49 = vmax.f32 %v2195_v47, 0.0 }
 0x472   : > { %2227 = vst.msk [vmem:[%s3509_s12 + $0x8] sm:$0xff] %vm412_vm1, %v2211_v49 }
 0x499   : > { %v2777_v53 = vpop.f32.mrf.mxu0 }
 0x49a   : > { %v2149_v39 = vadd.f32 %v2777_v53, %v2759_v50 }
 0x49b   : > { %v2140_v21 = vpop.f32.mrf.mxu0 }
 0x49c   : > { %v2200_v40 = vadd.f32 %v3503_v23, %v2149_v39  ;;  %v2141_v32 = vadd.f32 %v2140_v21, %v2015_v52 }
 0x49d   : > { %v2778_v18 = vpop.f32.mrf.mxu0 }
 0x49e   : > { %v2216_v55 = vmax.f32 %v2200_v40, 0.0  ;;  %v2198_v56 = vadd.f32 %v3503_v23, %v2141_v32  ;;  %v2152_v57 = vadd.f32 %v2778_v18, %v2760_v38 }
 0x49f   : > { %v2143_v58 = vpop.f32.mrf.mxu0 }
 0x4a0   : > { %2232 = vst.msk [vmem:[%s3509_s12 + $0x30] sm:$0xff] %vm412_vm1, %v2216_v55  ;;  %v2214_v41 = vmax.f32 %v2198_v56, 0.0  ;;  %v2201_v42 = vadd.f32 %v3503_v23, %v2152_v57  ;;  %v2144_v59 = vadd.f32 %v2143_v58, %v2018_v22 }
 0x4a2   : > { %2230 = vst.msk [vmem:[%s3509_s12 + $0x20] sm:$0xff] %vm412_vm1, %v2214_v41  ;;  %v2217_v48 = vmax.f32 %v2201_v42, 0.0  ;;  %v2199_v60 = vadd.f32 %v3503_v23, %v2144_v59 }
 0x4a4   : > { %2233 = vst.msk [vmem:[%s3509_s12 + $0x38] sm:$0xff] %vm412_vm1, %v2217_v48  ;;  %v2215_v61 = vmax.f32 %v2199_v60, 0.0 }
 0x4a6   : > { %2231 = vst.msk [vmem:[%s3509_s12 + $0x28] sm:$0xff] %vm412_vm1, %v2215_v61 }
 0x4a9   : > { %v2781_v63 = vpop.f32.mrf.mxu0 }
 0x4aa   : > { %v2165_v1 = vadd.f32 %v2781_v63, %v2763_v45 }
 0x4ab   : > { %v2156_v2 = vpop.f32.mrf.mxu0 }
 0x4ac   : > { %v2204_v51 = vadd.f32 %v3503_v23, %v2165_v1  ;;  %v2157_v54 = vadd.f32 %v2156_v2, %v2031_v62 }
 0x4ad   : > { %v2782_v3 = vpop.f32.mrf.mxu0 }
 0x4ae   : > { %v2220_v5 = vmax.f32 %v2204_v51, 0.0  ;;  %v2202_v6 = vadd.f32 %v3503_v23, %v2157_v54  ;;  %v2168_v7 = vadd.f32 %v2782_v3, %v2764_v0 }
 0x4af   : > { %v2159_v8 = vpop.f32.mrf.mxu0 }
 0x4b0   : > { %2236 = vst.msk [vmem:[%s3509_s12 + $0x50] sm:$0xff] %vm412_vm1, %v2220_v5  ;;  %v2218_v9 = vmax.f32 %v2202_v6, 0.0  ;;  %v2205_v10 = vadd.f32 %v3503_v23, %v2168_v7  ;;  %v2160_v13 = vadd.f32 %v2159_v8, %v2034_v4 }
 0x4b2   : > { %2234 = vst.msk [vmem:[%s3509_s12 + $0x40] sm:$0xff] %vm412_vm1, %v2218_v9  ;;  %v2221_v16 = vmax.f32 %v2205_v10, 0.0  ;;  %v2203_v11 = vadd.f32 %v3503_v23, %v2160_v13 }
 0x4b4   : > { %2237 = vst.msk [vmem:[%s3509_s12 + $0x58] sm:$0xff] %vm412_vm1, %v2221_v16  ;;  %v2219_v12 = vmax.f32 %v2203_v11, 0.0 }
 0x4b6   : > { %2235 = vst.msk [vmem:[%s3509_s12 + $0x48] sm:$0xff] %vm412_vm1, %v2219_v12 }
 0x4b9   : > { %v2785_v33 = vpop.f32.mrf.mxu0 }
 0x4ba   : > { %v2181_v25 = vadd.f32 %v2785_v33, %v2767_v20 }
 0x4bb   : > { %v2172_v26 = vpop.f32.mrf.mxu0 }
 0x4bc   : > { %v2208_v43 = vadd.f32 %v3503_v23, %v2181_v25  ;;  %v2173_v27 = vadd.f32 %v2172_v26, %v2047_v24 }
 0x4bd   : > { %v2786_v28 = vpop.f32.mrf.mxu0 }
 0x4be   : > { %v2224_v29 = vmax.f32 %v2208_v43, 0.0  ;;  %v2206_v14 = vadd.f32 %v3503_v23, %v2173_v27  ;;  %v2184_v30 = vadd.f32 %v2786_v28, %v2768_v34 }
 0x4bf   : > { %v2175_v44 = vpop.f32.mrf.mxu0 }
 0x4c0   : > { %2240 = vst.msk [vmem:[%s3509_s12 + $0x70] sm:$0xff] %vm412_vm1, %v2224_v29  ;;  %v2222_v17 = vmax.f32 %v2206_v14, 0.0  ;;  %v2209_v19 = vadd.f32 %v3503_v23, %v2184_v30  ;;  %v2176_v31 = vadd.f32 %v2175_v44, %v2050_v15 }
 0x4c2   : > { %2238 = vst.msk [vmem:[%s3509_s12 + $0x60] sm:$0xff] %vm412_vm1, %v2222_v17  ;;  %v2225_v35 = vmax.f32 %v2209_v19, 0.0  ;;  %v2207_v36 = vadd.f32 %v3503_v23, %v2176_v31 }
 0x4c4   : > { %2241 = vst.msk [vmem:[%s3509_s12 + $0x78] sm:$0xff] %vm412_vm1, %v2225_v35  ;;  %v2223_v37 = vmax.f32 %v2207_v36, 0.0 }
 0x4c6   : > { %2239 = vst.msk [vmem:[%s3509_s12 + $0x68] sm:$0xff] %vm412_vm1, %v2223_v37 }
 0x4c7 PF: > { %s16_s25 = sadd.s32 1, %s3037_s25   ;;  %s3580_s21 = smov %s3029_s23 }
 0x4c8   : > { %p13_p7 = scmp.ge.s32.totalorder %s16_s25, 6   ;;  %s3581_s22 = smov %s3033_s24 }
 0x4c9   : > { %s3582_s23 = smov %s3585_s26  ;;  %s3583_s24 = smov %s3589_s27 }
 0x4ca   :  { %15 = sbr.rel (!%p13_p7) target bundleno = 3 (0x3), region = 80 }

</bundles_post_ra>
